<compile_context>
chip_gen: v7x
topology: tpu7x:2x2x1
jax: 0.10.0
libtpu: 0.0.40
codegen_flags: <defaults>
</compile_context>

<pallas_src>
import jax
import jax.numpy as jnp
from jax.experimental import pallas as pl
from jax.experimental.pallas import tpu as pltpu


def _round_up(a, m):
    return ((a + m - 1) // m) * m


def dnn4_kernel(x_ref, w1_ref, b1_ref, w2_ref, b2_ref, w3_ref, b3_ref, o_ref):
    # Layer 1: Linear + ReLU (MXU matmul, f32 accumulate, f32 epilogue)
    h1 = jnp.dot(x_ref[...], w1_ref[...], preferred_element_type=jnp.float32)
    h1 = jnp.maximum(h1 + b1_ref[...].astype(jnp.float32), 0.0)

    # Layer 2: Linear + ReLU
    h2 = jnp.dot(h1.astype(w2_ref.dtype), w2_ref[...],
                 preferred_element_type=jnp.float32)
    h2 = jnp.maximum(h2 + b2_ref[...].astype(jnp.float32), 0.0)

    # Layer 3: Linear
    out = jnp.dot(h2.astype(w3_ref.dtype), w3_ref[...],
                  preferred_element_type=jnp.float32)
    o_ref[...] = (out + b3_ref[...].astype(jnp.float32)).astype(o_ref.dtype)


def dnn4_forward(x, params, *, batch_tile=512, compute_dtype=None):
    """x: [B, inputsize]. params: dict of pre-transposed weights / biases.

    batch_tile : target rows per grid step (swept/clamped internally).
    compute_dtype : e.g. jnp.bfloat16 to halve HBM read traffic for x/weights;
                    biases and all accumulation/epilogue stay f32.
    """
    w1, b1 = params["w1"], params["b1"]
    w2, b2 = params["w2"], params["b2"]
    w3, b3 = params["w3"], params["b3"]

    B, d_in = x.shape
    d_h1 = w1.shape[1]
    d_h2 = w2.shape[1]
    d_out = w3.shape[1]

    if compute_dtype is not None:
        x = x.astype(compute_dtype)
        w1 = w1.astype(compute_dtype)
        w2 = w2.astype(compute_dtype)
        w3 = w3.astype(compute_dtype)
        # biases remain f32: added after the MXU in the f32 epilogue.

    x_itemsize = jnp.dtype(x.dtype).itemsize

    # ---- choose batch tile --------------------------------------------------
    # Cap the tile so x/out double buffers + f32 intermediates stay well under
    # the smallest scoped-VMEM budget (v7x: 32 MiB default / 64 MiB physical).
    VMEM_BUDGET = 24 * 1024 * 1024
    per_row = 2 * (d_in * x_itemsize + d_out * 4) + (d_h1 + d_h2) * 4
    max_rows = max(8, (VMEM_BUDGET // max(per_row, 1)) // 8 * 8)

    bt = max(8, min(batch_tile, _round_up(B, 8), max_rows))
    bt = _round_up(bt, 8)
    # Prefer >= 2 grid steps so v7x's dual TensorCores both get work on the
    # "parallel" batch axis (harmless on single-TC v5e/v6e).
    if _round_up(B, bt) // bt < 2 and bt > 8:
        bt = max(8, _round_up(-(-bt // 2), 8))

    B_pad = _round_up(B, bt)
    grid = (B_pad // bt,)

    x_p = x if B_pad == B else jnp.pad(x, ((0, B_pad - B), (0, 0)))

    # ---- compiler hints ------------------------------------------------------
    param_bytes = sum(
        int(jnp.dtype(a.dtype).itemsize) * a.size for a in (w1, b1, w2, b2, w3, b3)
    )
    needed = bt * per_row + 2 * param_bytes + (2 << 20)
    vmem_limit = int(min(max(needed, 32 << 20), 64 << 20))

    flops = 2 * B_pad * (d_in * d_h1 + d_h1 * d_h2 + d_h2 * d_out)
    bytes_accessed = B_pad * d_in * x_itemsize + param_bytes + B_pad * d_out * 4
    cost = pl.CostEstimate(
        flops=flops, transcendentals=0, bytes_accessed=bytes_accessed
    )

    # Batch is tiled across the grid; weights/biases use constant (0,0)
    # index_maps so Mosaic keeps them VMEM-resident across grid steps.
    in_specs = [
        pl.BlockSpec((bt, d_in), lambda i: (i, 0)),      # x tile
        pl.BlockSpec((d_in, d_h1), lambda i: (0, 0)),    # w1 (full, resident)
        pl.BlockSpec((1, d_h1), lambda i: (0, 0)),       # b1
        pl.BlockSpec((d_h1, d_h2), lambda i: (0, 0)),    # w2
        pl.BlockSpec((1, d_h2), lambda i: (0, 0)),       # b2
        pl.BlockSpec((d_h2, d_out), lambda i: (0, 0)),   # w3
        pl.BlockSpec((1, d_out), lambda i: (0, 0)),      # b3
    ]
    out_specs = pl.BlockSpec((bt, d_out), lambda i: (i, 0))

    out_padded = pl.pallas_call(
        dnn4_kernel,
        out_shape=jax.ShapeDtypeStruct((B_pad, d_out), jnp.float32),
        grid_spec=pltpu.PrefetchScalarGridSpec(
            num_scalar_prefetch=0,
            grid=grid,
            in_specs=in_specs,
            out_specs=out_specs,
        ),
        compiler_params=pltpu.CompilerParams(
            dimension_semantics=("parallel",),
            vmem_limit_bytes=vmem_limit,
        ),
        cost_estimate=cost,
    )(x_p, w1, b1, w2, b2, w3, b3)

    return out_padded[:B] if B_pad != B else out_padded


def init_dnn4_params(key, inputsize, outputsize):
    """Deterministic synthetic init matching DNN4's layer shapes.

    PyTorch stores Linear weights as [out, in]; we keep them as [in, out]
    (already transposed) so the kernel does x @ W + b.
    """
    k1, k2, k3, k4, k5, k6 = jax.random.split(key, 6)
    scale = 0.1
    return {
        "w1": scale * jax.random.normal(k1, (inputsize, 32), jnp.float32),
        "b1": scale * jax.random.normal(k2, (1, 32), jnp.float32),
        "w2": scale * jax.random.normal(k3, (32, 16), jnp.float32),
        "b2": scale * jax.random.normal(k4, (1, 16), jnp.float32),
        "w3": scale * jax.random.normal(k5, (16, outputsize), jnp.float32),
        "b3": scale * jax.random.normal(k6, (1, outputsize), jnp.float32),
    }


def dnn4_reference(x, params):
    h1 = jnp.maximum(x @ params["w1"] + params["b1"], 0.0)
    h2 = jnp.maximum(h1 @ params["w2"] + params["b2"], 0.0)
    return h2 @ params["w3"] + params["b3"]


if __name__ == "__main__":
    key = jax.random.PRNGKey(0)
    kx, kp = jax.random.split(key)

    inputsize = 24
    outputsize = 4
    params = init_dnn4_params(kp, inputsize, outputsize)

    # 1) tile-aligned batch -> 2 "parallel" grid steps (dual-TC friendly), f32.
    x = jax.random.normal(kx, (1024, inputsize), jnp.float32)
    out = jax.block_until_ready(dnn4_forward(x, params, batch_tile=512))
    ref = dnn4_reference(x, params)
    assert out.shape == ref.shape
    assert jnp.allclose(out, ref, atol=1e-5, rtol=1e-5), "f32 mismatch vs reference"

    # 2) ragged batch exercises the pad-and-slice tail path (no divisibility assert).
    x2 = x[:1000]
    out2 = jax.block_until_ready(dnn4_forward(x2, params, batch_tile=512))
    assert out2.shape == (1000, outputsize)
    assert jnp.allclose(out2, dnn4_reference(x2, params), atol=1e-5, rtol=1e-5), \
        "ragged-batch mismatch vs reference"

    # 3) bf16 activations/weights path (halves HBM read traffic; f32 accumulate).
    out3 = jax.block_until_ready(
        dnn4_forward(x, params, batch_tile=512, compute_dtype=jnp.bfloat16)
    )
    assert jnp.allclose(out3, ref, atol=5e-2, rtol=5e-2), "bf16 mismatch vs reference"

    print("KERNEL_OK")
</pallas_src>

<mosaic_0001>
module attributes {stable_mosaic.version = 11 : i64} {
  func.func @dnn4_kernel(%arg0: i32, %arg1: memref<512x24xf32, #tpu.memory_space<vmem>>, %arg2: memref<24x32xf32, #tpu.memory_space<vmem>>, %arg3: memref<1x32xf32, #tpu.memory_space<vmem>>, %arg4: memref<32x16xf32, #tpu.memory_space<vmem>>, %arg5: memref<1x16xf32, #tpu.memory_space<vmem>>, %arg6: memref<16x4xf32, #tpu.memory_space<vmem>>, %arg7: memref<1x4xf32, #tpu.memory_space<vmem>>, %arg8: memref<512x4xf32, #tpu.memory_space<vmem>>) attributes {dimension_semantics = [#tpu.dimension_semantics<parallel>], iteration_bounds = array<i64: 2>, scalar_prefetch = 0 : i64, scratch_operands = 0 : i64, tpu.core_type = #tpu.core_type<tc>, window_params = [{transform_indices = @transform_0, window_bounds = array<i64: 512, 24>}, {pipeline_mode = #tpu.pipeline_mode<synchronous>, transform_indices = @transform_1, window_bounds = array<i64: 24, 32>}, {pipeline_mode = #tpu.pipeline_mode<synchronous>, transform_indices = @transform_2, window_bounds = array<i64: 1, 32>}, {pipeline_mode = #tpu.pipeline_mode<synchronous>, transform_indices = @transform_3, window_bounds = array<i64: 32, 16>}, {pipeline_mode = #tpu.pipeline_mode<synchronous>, transform_indices = @transform_4, window_bounds = array<i64: 1, 16>}, {pipeline_mode = #tpu.pipeline_mode<synchronous>, transform_indices = @transform_5, window_bounds = array<i64: 16, 4>}, {pipeline_mode = #tpu.pipeline_mode<synchronous>, transform_indices = @transform_6, window_bounds = array<i64: 1, 4>}, {transform_indices = @transform_7, window_bounds = array<i64: 512, 4>}]} {
    %c0 = arith.constant 0 : index
    %c0_0 = arith.constant 0 : index
    %0 = vector.load %arg1[%c0, %c0_0] : memref<512x24xf32, #tpu.memory_space<vmem>>, vector<512x24xf32>
    %c0_1 = arith.constant 0 : index
    %c0_2 = arith.constant 0 : index
    %1 = vector.load %arg2[%c0_1, %c0_2] : memref<24x32xf32, #tpu.memory_space<vmem>>, vector<24x32xf32>
    %cst = arith.constant dense<0.000000e+00> : vector<512x32xf32>
    %2 = tpu.matmul %0, %1, %cst {dimension_numbers = #tpu.dot_dimension_numbers<[1], [0], [0], [1], [0, 0, 1, 1], [], []>} : vector<512x24xf32>, vector<24x32xf32>, vector<512x32xf32> -> vector<512x32xf32>
    %c0_3 = arith.constant 0 : index
    %c0_4 = arith.constant 0 : index
    %3 = vector.load %arg3[%c0_3, %c0_4] : memref<1x32xf32, #tpu.memory_space<vmem>>, vector<1x32xf32>
    %4 = vector.broadcast %3 : vector<1x32xf32> to vector<512x32xf32>
    %5 = arith.addf %2, %4 : vector<512x32xf32>
    %cst_5 = arith.constant 0.000000e+00 : f32
    %6 = vector.broadcast %cst_5 : f32 to vector<512x32xf32>
    %7 = arith.maximumf %5, %6 : vector<512x32xf32>
    %c0_6 = arith.constant 0 : index
    %c0_7 = arith.constant 0 : index
    %8 = vector.load %arg4[%c0_6, %c0_7] : memref<32x16xf32, #tpu.memory_space<vmem>>, vector<32x16xf32>
    %cst_8 = arith.constant dense<0.000000e+00> : vector<512x16xf32>
    %9 = tpu.matmul %7, %8, %cst_8 {dimension_numbers = #tpu.dot_dimension_numbers<[1], [0], [0], [1], [0, 0, 1, 1], [], []>} : vector<512x32xf32>, vector<32x16xf32>, vector<512x16xf32> -> vector<512x16xf32>
    %c0_9 = arith.constant 0 : index
    %c0_10 = arith.constant 0 : index
    %10 = vector.load %arg5[%c0_9, %c0_10] : memref<1x16xf32, #tpu.memory_space<vmem>>, vector<1x16xf32>
    %11 = vector.broadcast %10 : vector<1x16xf32> to vector<512x16xf32>
    %12 = arith.addf %9, %11 : vector<512x16xf32>
    %cst_11 = arith.constant 0.000000e+00 : f32
    %13 = vector.broadcast %cst_11 : f32 to vector<512x16xf32>
    %14 = arith.maximumf %12, %13 : vector<512x16xf32>
    %c0_12 = arith.constant 0 : index
    %c0_13 = arith.constant 0 : index
    %15 = vector.load %arg6[%c0_12, %c0_13] : memref<16x4xf32, #tpu.memory_space<vmem>>, vector<16x4xf32>
    %cst_14 = arith.constant dense<0.000000e+00> : vector<512x4xf32>
    %16 = tpu.matmul %14, %15, %cst_14 {dimension_numbers = #tpu.dot_dimension_numbers<[1], [0], [0], [1], [0, 0, 1, 1], [], []>} : vector<512x16xf32>, vector<16x4xf32>, vector<512x4xf32> -> vector<512x4xf32>
    %c0_15 = arith.constant 0 : index
    %c0_16 = arith.constant 0 : index
    %17 = vector.load %arg7[%c0_15, %c0_16] : memref<1x4xf32, #tpu.memory_space<vmem>>, vector<1x4xf32>
    %18 = vector.broadcast %17 : vector<1x4xf32> to vector<512x4xf32>
    %19 = arith.addf %16, %18 : vector<512x4xf32>
    %c0_17 = arith.constant 0 : index
    %c0_18 = arith.constant 0 : index
    %20 = vector.load %arg8[%c0_17, %c0_18] : memref<512x4xf32, #tpu.memory_space<vmem>>, vector<512x4xf32>
    tpu.vector_store %arg8[%c0_17, %c0_18], %19 {strides = array<i32>} : memref<512x4xf32, #tpu.memory_space<vmem>>, vector<512x4xf32>,
    return
  }
  func.func @transform_0(%arg0: i32) -> (i32, i32) {
    %c0_i32 = arith.constant 0 : i32
    %c0_i32_0 = arith.constant 0 : i32
    return %arg0, %c0_i32 : i32, i32
  }
  func.func @transform_1(%arg0: i32) -> (i32, i32) {
    %c0_i32 = arith.constant 0 : i32
    %c0_i32_0 = arith.constant 0 : i32
    %c0_i32_1 = arith.constant 0 : i32
    return %c0_i32, %c0_i32_0 : i32, i32
  }
  func.func @transform_2(%arg0: i32) -> (i32, i32) {
    %c0_i32 = arith.constant 0 : i32
    %c0_i32_0 = arith.constant 0 : i32
    %c0_i32_1 = arith.constant 0 : i32
    return %c0_i32, %c0_i32_0 : i32, i32
  }
  func.func @transform_3(%arg0: i32) -> (i32, i32) {
    %c0_i32 = arith.constant 0 : i32
    %c0_i32_0 = arith.constant 0 : i32
    %c0_i32_1 = arith.constant 0 : i32
    return %c0_i32, %c0_i32_0 : i32, i32
  }
  func.func @transform_4(%arg0: i32) -> (i32, i32) {
    %c0_i32 = arith.constant 0 : i32
    %c0_i32_0 = arith.constant 0 : i32
    %c0_i32_1 = arith.constant 0 : i32
    return %c0_i32, %c0_i32_0 : i32, i32
  }
  func.func @transform_5(%arg0: i32) -> (i32, i32) {
    %c0_i32 = arith.constant 0 : i32
    %c0_i32_0 = arith.constant 0 : i32
    %c0_i32_1 = arith.constant 0 : i32
    return %c0_i32, %c0_i32_0 : i32, i32
  }
  func.func @transform_6(%arg0: i32) -> (i32, i32) {
    %c0_i32 = arith.constant 0 : i32
    %c0_i32_0 = arith.constant 0 : i32
    %c0_i32_1 = arith.constant 0 : i32
    return %c0_i32, %c0_i32_0 : i32, i32
  }
  func.func @transform_7(%arg0: i32) -> (i32, i32) {
    %c0_i32 = arith.constant 0 : i32
    %c0_i32_0 = arith.constant 0 : i32
    return %arg0, %c0_i32 : i32, i32
  }
}

</mosaic_0001>

<bundles_post_ra>
// kernel: tpu_custom_call.1
= control target key start
LH: loop header
LB: loop body
LE: loop exit
PB: predicated region body
PF: predicated region fallthrough
CT: control target
= control target key end

     0   :  { %s3148_s24 = smov 0   ;;  %s3890_s0 = inlined_call_operand.vmem [shape: f32[1024,24], index: 0, kind: input, shape index: {}]   ;;  %s3891_s1 = inlined_call_operand.vmem [shape: f32[24,32], index: 1, kind: input, shape index: {}]   ;;  %s3892_s2 = inlined_call_operand.vmem [shape: f32[1,32], index: 2, kind: input, shape index: {}]   ;;  %s3893_s3 = inlined_call_operand.vmem [shape: f32[32,16], index: 3, kind: input, shape index: {}]   ;;  %s3894_s4 = inlined_call_operand.vmem [shape: f32[1,16], index: 4, kind: input, shape index: {}]   ;;  %s3895_s5 = inlined_call_operand.vmem [shape: f32[16,4], index: 5, kind: input, shape index: {}]   ;;  %s3896_s6 = inlined_call_operand.vmem [shape: f32[1,4], index: 6, kind: input, shape index: {}]   ;;  %s3897_s7 = inlined_call_operand.vmem [shape: f32[1024,4], index: 7, kind: output, shape index: {}]  }
   0x1 LB: > { %s2359_s25 = sadd.s32 4294967295, %s3106_s24   ;;  %p2363_p0 = scmp.ge.s32.totalorder %s3106_s24, 1  ;;  %s3106_s24 = sphi %s3148_s24, %s17_s24  }
   0x2   : > { %p238_p1 = scmp.lt.s32.totalorder %s3106_s24, 3 }
   0x4   : > { %p239_p2 = pnand %p2363_p0, %p238_p1 }
   0x5   : > { %v346_v0 = vld [vmem:[%s3891_s1] sm:$0xff] (!%p239_p2)  ;;  %v347_v1 = vld [vmem:[%s3891_s1 + $0x8] sm:$0xff] (!%p239_p2)  ;;  %s2364_s30 = sshll.u32 (!%p239_p2), %s2359_s25, 6  ;;  %v348_v3 = vld [vmem:[%s3891_s1 + $0x10] sm:$0xff] (!%p239_p2)  ;;  %vm356_vm0 = vcmask (!%p239_p2), 195584   ;;  %vm1009_vm1 = vcmask (!%p239_p2), 261120  }
   0x6   : > { %242 = sbr.rel (%p239_p2) target bundleno = 794 (0x31a), region = 48  ;;  %v3072_v2 = vpack.c.bf16 (!%p239_p2), %v347_v1, %v346_v0  ;;  %p271_p3 = scmp.lt.s32.totalorder (!%p239_p2), %s2364_s30, 127  ;;  %v998_v4 = vld [vmem:[%s3893_s3] sm:$0xff] (!%p239_p2)  ;;  %v999_v5 = vld [vmem:[%s3893_s3 + $0x8] sm:$0xff] (!%p239_p2)  ;;  %v1000_v13 = vld [vmem:[%s3893_s3 + $0x10] sm:$0xff] (!%p239_p2)  ;;  %vm1660_vm2 = vcmask (!%p239_p2), 130048  }
   0x7   : > { %v3076_v6 = vpack.c.bf16 (!%p239_p2), %v999_v5, %v998_v4  ;;  %v1001_v14 = vld [vmem:[%s3893_s3 + $0x18] sm:$0xff] (!%p239_p2)  ;;  %vm2238_vm3 = vcmask (!%p239_p2), 31744  }
   0x8   : > { %3073 = vmatprep.subr.bf16.mxu0 (!%p239_p2), %v3072_v2  ;;  %3088 = vmatprep.subr.bf16.mxu1 (!%p239_p2), %v3072_v2  ;;  %v3080_v17 = vpack.c.bf16 (!%p239_p2), %v1001_v14, %v1000_v13 }
   0x9   : > { %3075 = vmatpush3.bf16.msra.mxu0 (!%p239_p2), %v3072_v2  ;;  %3090 = vmatpush3.bf16.msra.mxu1 (!%p239_p2), %v3072_v2 }
   0xa   : > { %2770 = vmatprep.subr.mxu0 (!%p239_p2), %v348_v3  ;;  %3089 = vmatprep.subr.mxu1 (!%p239_p2), %v348_v3 }
   0xd   : > { %s3899_s30 = smov (!%p271_p3, %s2364_s30), 127  ;;  %2771 = vmatpush3.msra.mxu0 %v348_v3  ;;  %3091 = vmatpush3.msra.mxu1 %v348_v3 }
   0xe   : > { %s2365_s14 = sshll.u32 %s3899_s30, 3  ;;  %3077 = vmatprep.subr.bf16.mxu1 %v3076_v6 }
   0xf   : > { %s3179_s17 = scalar_lea.vmem %s3890_s0, %s2365_s14  ;;  %s3693_s13 = scalar_lea.vmem %s3897_s7, %s2365_s14 }
  0x10   : > { %v282_v7 = vld [vmem:[%s3179_s17] sm:$0xff]  ;;  %v283_v8 = vld [vmem:[%s3179_s17 + $0x8] sm:$0xff]  ;;  %v284_v9 = vld [vmem:[%s3179_s17 + $0x10] sm:$0xff] }
  0x11   : > { %2772 = vmatprep.mubr.msk.f32.mxu0 %vm356_vm0, %v282_v7  ;;  %v285_v10 = vld [vmem:[%s3179_s17 + $0x18] sm:$0xff]  ;;  %v286_v11 = vld [vmem:[%s3179_s17 + $0x20] sm:$0xff]  ;;  %v287_v12 = vld [vmem:[%s3179_s17 + $0x28] sm:$0xff] }
  0x12   : > { %2773 = vmatmul.mubr.msk.f32.vlgmr.msra.gmra.mrb[0].mxu0 %vm356_vm0, %v283_v8  ;;  %v288_v15 = vld [vmem:[%s3179_s17 + $0x30] sm:$0xff]  ;;  %v314_v16 = vld [vmem:[%s3179_s17 + $0x100] sm:$0xff]  ;;  %v289_v18 = vld [vmem:[%s3179_s17 + $0x38] sm:$0xff] }
  0x13   : > { %2775 = vmatprep.mubr.msk.f32.mxu0 %vm356_vm0, %v284_v9  ;;  %2820 = vmatprep.mubr.msk.f32.mxu1 %vm356_vm0, %v314_v16  ;;  %v315_v19 = vld [vmem:[%s3179_s17 + $0x108] sm:$0xff]  ;;  %v316_v20 = vld [vmem:[%s3179_s17 + $0x110] sm:$0xff]  ;;  %v290_v21 = vld [vmem:[%s3179_s17 + $0x40] sm:$0xff] }
  0x14   : > { %2821 = vmatmul.mubr.msk.f32.vlgmr.msra.gmra.mrb[0].mxu1 %vm356_vm0, %v315_v19  ;;  %v317_v22 = vld [vmem:[%s3179_s17 + $0x118] sm:$0xff]  ;;  %v318_v23 = vld [vmem:[%s3179_s17 + $0x120] sm:$0xff]  ;;  %v291_v24 = vld [vmem:[%s3179_s17 + $0x48] sm:$0xff] }
  0x15   : > { %2823 = vmatprep.mubr.msk.f32.mxu1 %vm356_vm0, %v316_v20  ;;  %3079 = vmatpush3.bf16.msra.mxu1 %v3076_v6  ;;  %v292_v25 = vld [vmem:[%s3179_s17 + $0x50] sm:$0xff]  ;;  %v319_v26 = vld [vmem:[%s3179_s17 + $0x128] sm:$0xff]  ;;  %v293_v28 = vld [vmem:[%s3179_s17 + $0x58] sm:$0xff] }
  0x16   : > { %2776 = vmatmul.mubr.msk.f32.gmra.mrb[2].mxu0 %vm356_vm0, %v285_v10  ;;  %3081 = vmatprep.subr.bf16.mxu1 %v3080_v17  ;;  %v320_v27 = vld [vmem:[%s3179_s17 + $0x130] sm:$0xff]  ;;  %v294_v29 = vld [vmem:[%s3179_s17 + $0x60] sm:$0xff]  ;;  %v321_v30 = vld [vmem:[%s3179_s17 + $0x138] sm:$0xff] }
  0x17   : > { %2778 = vmatprep.mubr.msk.f32.mxu0 %vm356_vm0, %v286_v11  ;;  %v322_v31 = vld [vmem:[%s3179_s17 + $0x140] sm:$0xff]  ;;  %v295_v32 = vld [vmem:[%s3179_s17 + $0x68] sm:$0xff]  ;;  %v296_v33 = vld [vmem:[%s3179_s17 + $0x70] sm:$0xff] }
  0x18   : > { %2824 = vmatmul.mubr.msk.f32.gmra.mrb[2].mxu1 %vm356_vm0, %v317_v22  ;;  %v323_v34 = vld [vmem:[%s3179_s17 + $0x148] sm:$0xff]  ;;  %v324_v35 = vld [vmem:[%s3179_s17 + $0x150] sm:$0xff]  ;;  %v297_v36 = vld [vmem:[%s3179_s17 + $0x78] sm:$0xff] }
  0x19   : > { %2826 = vmatprep.mubr.msk.f32.mxu1 %vm356_vm0, %v318_v23  ;;  %3083 = vmatpush3.bf16.msra.mxu1 %v3080_v17  ;;  %v298_v37 = vld [vmem:[%s3179_s17 + $0x80] sm:$0xff]  ;;  %v325_v38 = vld [vmem:[%s3179_s17 + $0x158] sm:$0xff]  ;;  %v299_v40 = vld [vmem:[%s3179_s17 + $0x88] sm:$0xff] }
  0x1a   : > { %2779 = vmatmul.mubr.msk.f32.gmra.mrb[4].mxu0 %vm356_vm0, %v287_v12  ;;  %v326_v39 = vld [vmem:[%s3179_s17 + $0x160] sm:$0xff]  ;;  %v300_v41 = vld [vmem:[%s3179_s17 + $0x90] sm:$0xff]  ;;  %v327_v42 = vld [vmem:[%s3179_s17 + $0x168] sm:$0xff] }
  0x1b   : > { %2781 = vmatprep.mubr.msk.f32.mxu0 %vm356_vm0, %v288_v15  ;;  %v328_v43 = vld [vmem:[%s3179_s17 + $0x170] sm:$0xff]  ;;  %v301_v44 = vld [vmem:[%s3179_s17 + $0x98] sm:$0xff]  ;;  %v302_v45 = vld [vmem:[%s3179_s17 + $0xa0] sm:$0xff] }
  0x1c   : > { %2827 = vmatmul.mubr.msk.f32.gmra.mrb[4].mxu1 %vm356_vm0, %v319_v26  ;;  %v329_v46 = vld [vmem:[%s3179_s17 + $0x178] sm:$0xff]  ;;  %v330_v47 = vld [vmem:[%s3179_s17 + $0x180] sm:$0xff]  ;;  %v303_v48 = vld [vmem:[%s3179_s17 + $0xa8] sm:$0xff] }
  0x1d   : > { %2829 = vmatprep.mubr.msk.f32.mxu1 %vm356_vm0, %v320_v27  ;;  %v304_v49 = vld [vmem:[%s3179_s17 + $0xb0] sm:$0xff]  ;;  %v331_v50 = vld [vmem:[%s3179_s17 + $0x188] sm:$0xff]  ;;  %v305_v52 = vld [vmem:[%s3179_s17 + $0xb8] sm:$0xff] }
  0x1e   : > { %2782 = vmatmul.mubr.msk.f32.gmra.mrb[6].mxu0 %vm356_vm0, %v289_v18  ;;  %v332_v51 = vld [vmem:[%s3179_s17 + $0x190] sm:$0xff]  ;;  %v306_v53 = vld [vmem:[%s3179_s17 + $0xc0] sm:$0xff]  ;;  %v333_v54 = vld [vmem:[%s3179_s17 + $0x198] sm:$0xff] }
  0x1f   : > { %2784 = vmatprep.mubr.msk.f32.mxu0 %vm356_vm0, %v290_v21  ;;  %v334_v55 = vld [vmem:[%s3179_s17 + $0x1a0] sm:$0xff]  ;;  %v307_v56 = vld [vmem:[%s3179_s17 + $0xc8] sm:$0xff]  ;;  %v308_v57 = vld [vmem:[%s3179_s17 + $0xd0] sm:$0xff] }
  0x20   : > { %2830 = vmatmul.mubr.msk.f32.gmra.mrb[6].mxu1 %vm356_vm0, %v321_v30  ;;  %v335_v58 = vld [vmem:[%s3179_s17 + $0x1a8] sm:$0xff]  ;;  %v336_v59 = vld [vmem:[%s3179_s17 + $0x1b0] sm:$0xff]  ;;  %v309_v60 = vld [vmem:[%s3179_s17 + $0xd8] sm:$0xff] }
  0x21   : > { %2832 = vmatprep.mubr.msk.f32.mxu1 %vm356_vm0, %v322_v31  ;;  %v310_v61 = vld [vmem:[%s3179_s17 + $0xe0] sm:$0xff]  ;;  %v337_v62 = vld [vmem:[%s3179_s17 + $0x1b8] sm:$0xff]  ;;  %v311_v0 = vld [vmem:[%s3179_s17 + $0xe8] sm:$0xff] }
  0x22   : > { %2785 = vmatmul.mubr.msk.f32.gmra.mrb[8].mxu0 %vm356_vm0, %v291_v24  ;;  %v338_v63 = vld [vmem:[%s3179_s17 + $0x1c0] sm:$0xff]  ;;  %v312_v1 = vld [vmem:[%s3179_s17 + $0xf0] sm:$0xff]  ;;  %v339_v2 = vld [vmem:[%s3179_s17 + $0x1c8] sm:$0xff] }
  0x23   : > { %2787 = vmatprep.mubr.msk.f32.mxu0 %vm356_vm0, %v292_v25  ;;  %v340_v3 = vld [vmem:[%s3179_s17 + $0x1d0] sm:$0xff]  ;;  %v313_v4 = vld [vmem:[%s3179_s17 + $0xf8] sm:$0xff]  ;;  %v342_v6 = vld [vmem:[%s3179_s17 + $0x1e0] sm:$0xff] }
  0x24   : > { %2833 = vmatmul.mubr.msk.f32.gmra.mrb[8].mxu1 %vm356_vm0, %v323_v34  ;;  %v341_v5 = vld [vmem:[%s3179_s17 + $0x1d8] sm:$0xff]  ;;  %v343_v7 = vld [vmem:[%s3179_s17 + $0x1e8] sm:$0xff]  ;;  %v344_v8 = vld [vmem:[%s3179_s17 + $0x1f0] sm:$0xff] }
  0x25   : > { %2835 = vmatprep.mubr.msk.f32.mxu1 %vm356_vm0, %v324_v35  ;;  %v345_v9 = vld [vmem:[%s3179_s17 + $0x1f8] sm:$0xff]  ;;  %v3318_v10 = vld [vmem:[%s3892_s2] ss:$0 sm:$0xff]  ;;  %v1652_v16 = vld [vmem:[%s3895_s5 + $0x8] sm:$0xff] }
  0x26   : > { %2788 = vmatmul.mubr.msk.f32.gmra.mrb[10].mxu0 %vm356_vm0, %v293_v28  ;;  %v1651_v15 = vld [vmem:[%s3895_s5] sm:$0xff] }
  0x27   : > { %2790 = vmatprep.mubr.msk.f32.mxu0 %vm356_vm0, %v294_v29  ;;  %v3084_v19 = vpack.c.bf16 %v1652_v16, %v1651_v15 }
  0x28   : > { %2836 = vmatmul.mubr.msk.f32.gmra.mrb[10].mxu1 %vm356_vm0, %v325_v38 }
  0x29   : > { %2838 = vmatprep.mubr.msk.f32.mxu1 %vm356_vm0, %v326_v39  ;;  %3085 = vmatprep.subr.bf16.mxu0 %v3084_v19 }
  0x2a   : > { %2791 = vmatmul.mubr.msk.f32.gmra.mrb[12].mxu0 %vm356_vm0, %v295_v32 }
  0x2b   : > { %2793 = vmatprep.mubr.msk.f32.mxu0 %vm356_vm0, %v296_v33  ;;  %3087 = vmatpush3.bf16.msra.mxu0 %v3084_v19 }
  0x2c   : > { %2839 = vmatmul.mubr.msk.f32.gmra.mrb[12].mxu1 %vm356_vm0, %v327_v42 }
  0x2d   : > { %2841 = vmatprep.mubr.msk.f32.mxu1 %vm356_vm0, %v328_v43 }
  0x2e   : > { %2794 = vmatmul.mubr.msk.f32.gmra.mrb[14].mxu0 %vm356_vm0, %v297_v36 }
  0x2f   : > { %2796 = vmatprep.mubr.msk.f32.mxu0 %vm356_vm0, %v298_v37 }
  0x30   : > { %2842 = vmatmul.mubr.msk.f32.gmra.mrb[14].mxu1 %vm356_vm0, %v329_v46 }
  0x31   : > { %2844 = vmatprep.mubr.msk.f32.mxu1 %vm356_vm0, %v330_v47 }
  0x32   : > { %2797 = vmatmul.mubr.msk.f32.gmra.mrb[16].mxu0 %vm356_vm0, %v299_v40 }
  0x33   : > { %2799 = vmatprep.mubr.msk.f32.mxu0 %vm356_vm0, %v300_v41 }
  0x34   : > { %2845 = vmatmul.mubr.msk.f32.gmra.mrb[16].mxu1 %vm356_vm0, %v331_v50 }
  0x35   : > { %2847 = vmatprep.mubr.msk.f32.mxu1 %vm356_vm0, %v332_v51 }
  0x36   : > { %2800 = vmatmul.mubr.msk.f32.gmra.mrb[18].mxu0 %vm356_vm0, %v301_v44 }
  0x37   : > { %2802 = vmatprep.mubr.msk.f32.mxu0 %vm356_vm0, %v302_v45 }
  0x38   : > { %2848 = vmatmul.mubr.msk.f32.gmra.mrb[18].mxu1 %vm356_vm0, %v333_v54 }
  0x39   : > { %2850 = vmatprep.mubr.msk.f32.mxu1 %vm356_vm0, %v334_v55 }
  0x3a   : > { %2803 = vmatmul.mubr.msk.f32.gmra.mrb[20].mxu0 %vm356_vm0, %v303_v48 }
  0x3b   : > { %2805 = vmatprep.mubr.msk.f32.mxu0 %vm356_vm0, %v304_v49 }
  0x3c   : > { %2851 = vmatmul.mubr.msk.f32.gmra.mrb[20].mxu1 %vm356_vm0, %v335_v58 }
  0x3d   : > { %2853 = vmatprep.mubr.msk.f32.mxu1 %vm356_vm0, %v336_v59 }
  0x3e   : > { %2806 = vmatmul.mubr.msk.f32.gmra.mrb[22].mxu0 %vm356_vm0, %v305_v52 }
  0x3f   : > { %2808 = vmatprep.mubr.msk.f32.mxu0 %vm356_vm0, %v306_v53 }
  0x40   : > { %2854 = vmatmul.mubr.msk.f32.gmra.mrb[22].mxu1 %vm356_vm0, %v337_v62 }
  0x41   : > { %2856 = vmatprep.mubr.msk.f32.mxu1 %vm356_vm0, %v338_v63 }
  0x42   : > { %2809 = vmatmul.mubr.msk.f32.gmra.mrb[24].mxu0 %vm356_vm0, %v307_v56 }
  0x43   : > { %2811 = vmatprep.mubr.msk.f32.mxu0 %vm356_vm0, %v308_v57 }
  0x44   : > { %2857 = vmatmul.mubr.msk.f32.gmra.mrb[24].mxu1 %vm356_vm0, %v339_v2 }
  0x45   : > { %2859 = vmatprep.mubr.msk.f32.mxu1 %vm356_vm0, %v340_v3 }
  0x46   : > { %2812 = vmatmul.mubr.msk.f32.gmra.mrb[26].mxu0 %vm356_vm0, %v309_v60 }
  0x47   : > { %2814 = vmatprep.mubr.msk.f32.mxu0 %vm356_vm0, %v310_v61 }
  0x48   : > { %2860 = vmatmul.mubr.msk.f32.gmra.mrb[26].mxu1 %vm356_vm0, %v341_v5 }
  0x49   : > { %2862 = vmatprep.mubr.msk.f32.mxu1 %vm356_vm0, %v342_v6 }
  0x4a   : > { %2815 = vmatmul.mubr.msk.f32.gmra.mrb[28].mxu0 %vm356_vm0, %v311_v0 }
  0x4b   : > { %2817 = vmatprep.mubr.msk.f32.mxu0 %vm356_vm0, %v312_v1 }
  0x4c   : > { %2863 = vmatmul.mubr.msk.f32.gmra.mrb[28].mxu1 %vm356_vm0, %v343_v7 }
  0x4d   : > { %2865 = vmatprep.mubr.msk.f32.mxu1 %vm356_vm0, %v344_v8 }
  0x4e   : > { %2818 = vmatmul.mubr.msk.f32.gmra.mrb[30].mxu0 %vm356_vm0, %v313_v4 }
  0x50   : > { %2866 = vmatmul.mubr.msk.f32.gmra.mrb[30].mxu1 %vm356_vm0, %v345_v9 }
  0xe5   : > { %v2774_v11 = vpop.f32.mrb[0].mxu0 }
  0xe6   : > { %v621_v12 = vadd.f32 %v2774_v11, %v3318_v10  ;;  %v615_v13 = vpop.f32.mrb[1].mxu0 }
  0xe7   : > { %v616_v14 = vadd.f32 %v3318_v10, %v615_v13  ;;  %v3335_v30 = vpop.f32.mrb[0].mxu1 }
  0xe8   : > { %v935_v20 = vmax.f32 %v621_v12, 0.0  ;;  %v3338_v31 = vpop.f32.mrb[1].mxu1 }
  0xe9   : > { %v934_v17 = vmax.f32 %v616_v14, 0.0  ;;  %v2777_v18 = vpop.f32.mrb[2].mxu0 }
  0xea   : > { %v631_v21 = vadd.f32 %v2777_v18, %v3318_v10  ;;  %v625_v22 = vpop.f32.mrb[3].mxu0 }
  0xeb   : > { %v626_v23 = vadd.f32 %v3318_v10, %v625_v22  ;;  %2876 = vmatprep.mubr.msk.f32.mxu1 %vm1009_vm1, %v934_v17  ;;  %v3343_v38 = vpop.f32.mrb[2].mxu1 }
  0xec   : > { %2877 = vmatmul.mubr.msk.f32.vlgmr.msra.gmra.mrb[32].mxu1 %vm1009_vm1, %v935_v20  ;;  %v937_v26 = vmax.f32 %v631_v21, 0.0  ;;  %v3346_v39 = vpop.f32.mrb[3].mxu1 }
  0xed   : > { %v936_v24 = vmax.f32 %v626_v23, 0.0  ;;  %v2780_v25 = vpop.f32.mrb[4].mxu0 }
  0xee   : > { %v641_v27 = vadd.f32 %v2780_v25, %v3318_v10  ;;  %v635_v28 = vpop.f32.mrb[5].mxu0 }
  0xef   : > { %v636_v29 = vadd.f32 %v3318_v10, %v635_v28  ;;  %2879 = vmatprep.mubr.msk.f32.mxu1 %vm1009_vm1, %v936_v24  ;;  %v3351_v46 = vpop.f32.mrb[4].mxu1 }
  0xf0   : > { %2880 = vmatmul.mubr.msk.f32.gmra.mrb[34].mxu1 %vm1009_vm1, %v937_v26  ;;  %v939_v34 = vmax.f32 %v641_v27, 0.0  ;;  %v3354_v47 = vpop.f32.mrb[5].mxu1 }
  0xf1   : > { %v938_v32 = vmax.f32 %v636_v29, 0.0  ;;  %v2783_v33 = vpop.f32.mrb[6].mxu0 }
  0xf2   : > { %v651_v35 = vadd.f32 %v2783_v33, %v3318_v10  ;;  %v645_v36 = vpop.f32.mrb[7].mxu0 }
  0xf3   : > { %v646_v37 = vadd.f32 %v3318_v10, %v645_v36  ;;  %2882 = vmatprep.mubr.msk.f32.mxu1 %vm1009_vm1, %v938_v32  ;;  %v3359_v54 = vpop.f32.mrb[6].mxu1 }
  0xf4   : > { %2883 = vmatmul.mubr.msk.f32.gmra.mrb[36].mxu1 %vm1009_vm1, %v939_v34  ;;  %v941_v42 = vmax.f32 %v651_v35, 0.0  ;;  %v3362_v55 = vpop.f32.mrb[7].mxu1 }
  0xf5   : > { %v940_v40 = vmax.f32 %v646_v37, 0.0  ;;  %v2786_v41 = vpop.f32.mrb[8].mxu0 }
  0xf6   : > { %v661_v43 = vadd.f32 %v2786_v41, %v3318_v10  ;;  %v655_v44 = vpop.f32.mrb[9].mxu0 }
  0xf7   : > { %v656_v45 = vadd.f32 %v3318_v10, %v655_v44  ;;  %2885 = vmatprep.mubr.msk.f32.mxu1 %vm1009_vm1, %v940_v40  ;;  %v3367_v62 = vpop.f32.mrb[8].mxu1 }
  0xf8   : > { %2886 = vmatmul.mubr.msk.f32.gmra.mrb[38].mxu1 %vm1009_vm1, %v941_v42  ;;  %v943_v50 = vmax.f32 %v661_v43, 0.0  ;;  %v3370_v63 = vpop.f32.mrb[9].mxu1 }
  0xf9   : > { %v942_v48 = vmax.f32 %v656_v45, 0.0  ;;  %v2789_v49 = vpop.f32.mrb[10].mxu0 }
  0xfa   : > { %v671_v51 = vadd.f32 %v2789_v49, %v3318_v10  ;;  %v665_v52 = vpop.f32.mrb[11].mxu0 }
  0xfb   : > { %v666_v53 = vadd.f32 %v3318_v10, %v665_v52  ;;  %2888 = vmatprep.mubr.msk.f32.mxu1 %vm1009_vm1, %v942_v48  ;;  %v3375_v6 = vpop.f32.mrb[10].mxu1 }
  0xfc   : > { %2889 = vmatmul.mubr.msk.f32.gmra.mrb[40].mxu1 %vm1009_vm1, %v943_v50  ;;  %v945_v58 = vmax.f32 %v671_v51, 0.0  ;;  %v3378_v7 = vpop.f32.mrb[11].mxu1 }
  0xfd   : > { %v944_v56 = vmax.f32 %v666_v53, 0.0  ;;  %v2792_v57 = vpop.f32.mrb[12].mxu0 }
  0xfe   : > { %v681_v59 = vadd.f32 %v2792_v57, %v3318_v10  ;;  %v675_v60 = vpop.f32.mrb[13].mxu0 }
  0xff   : > { %v676_v61 = vadd.f32 %v3318_v10, %v675_v60  ;;  %2891 = vmatprep.mubr.msk.f32.mxu1 %vm1009_vm1, %v944_v56  ;;  %v3383_v15 = vpop.f32.mrb[12].mxu1 }
 0x100   : > { %2892 = vmatmul.mubr.msk.f32.gmra.mrb[42].mxu1 %vm1009_vm1, %v945_v58  ;;  %v947_v2 = vmax.f32 %v681_v59, 0.0  ;;  %v3386_v16 = vpop.f32.mrb[13].mxu1 }
 0x101   : > { %v946_v0 = vmax.f32 %v676_v61, 0.0  ;;  %v2795_v1 = vpop.f32.mrb[14].mxu0 }
 0x102   : > { %v691_v3 = vadd.f32 %v2795_v1, %v3318_v10  ;;  %v685_v4 = vpop.f32.mrb[15].mxu0 }
 0x103   : > { %v686_v5 = vadd.f32 %v3318_v10, %v685_v4  ;;  %2894 = vmatprep.mubr.msk.f32.mxu1 %vm1009_vm1, %v946_v0  ;;  %v3391_v23 = vpop.f32.mrb[14].mxu1 }
 0x104   : > { %2895 = vmatmul.mubr.msk.f32.gmra.mrb[44].mxu1 %vm1009_vm1, %v947_v2  ;;  %v949_v11 = vmax.f32 %v691_v3, 0.0  ;;  %v3394_v24 = vpop.f32.mrb[15].mxu1 }
 0x105   : > { %v948_v8 = vmax.f32 %v686_v5, 0.0  ;;  %v2798_v9 = vpop.f32.mrb[16].mxu0 }
 0x106   : > { %v701_v12 = vadd.f32 %v2798_v9, %v3318_v10  ;;  %v695_v13 = vpop.f32.mrb[17].mxu0 }
 0x107   : > { %v696_v14 = vadd.f32 %v3318_v10, %v695_v13  ;;  %2897 = vmatprep.mubr.msk.f32.mxu1 %vm1009_vm1, %v948_v8  ;;  %v3399_v33 = vpop.f32.mrb[16].mxu1 }
 0x108   : > { %2898 = vmatmul.mubr.msk.f32.gmra.mrb[46].mxu1 %vm1009_vm1, %v949_v11  ;;  %v951_v19 = vmax.f32 %v701_v12, 0.0  ;;  %v3402_v34 = vpop.f32.mrb[17].mxu1 }
 0x109   : > { %v950_v17 = vmax.f32 %v696_v14, 0.0  ;;  %v2801_v18 = vpop.f32.mrb[18].mxu0 }
 0x10a   : > { %v711_v20 = vadd.f32 %v2801_v18, %v3318_v10  ;;  %v705_v21 = vpop.f32.mrb[19].mxu0  ;;  %v776_v18 = vadd.f32 %v3318_v10, %v3338_v31 }
 0x10b   : > { %v706_v22 = vadd.f32 %v3318_v10, %v705_v21  ;;  %2900 = vmatprep.mubr.msk.f32.mxu1 %vm1009_vm1, %v950_v17  ;;  %v3407_v43 = vpop.f32.mrb[18].mxu1 }
 0x10c   : > { %2901 = vmatmul.mubr.msk.f32.gmra.mrb[48].mxu1 %vm1009_vm1, %v951_v19  ;;  %v953_v27 = vmax.f32 %v711_v20, 0.0  ;;  %v3410_v44 = vpop.f32.mrb[19].mxu1 }
 0x10d   : > { %v952_v25 = vmax.f32 %v706_v22, 0.0  ;;  %v2804_v26 = vpop.f32.mrb[20].mxu0 }
 0x10e   : > { %v721_v28 = vadd.f32 %v2804_v26, %v3318_v10  ;;  %v715_v29 = vpop.f32.mrb[21].mxu0 }
 0x10f   : > { %v716_v32 = vadd.f32 %v3318_v10, %v715_v29  ;;  %2903 = vmatprep.mubr.msk.f32.mxu1 %vm1009_vm1, %v952_v25  ;;  %v3415_v53 = vpop.f32.mrb[20].mxu1  ;;  %v786_v29 = vadd.f32 %v3318_v10, %v3346_v39  ;;  %v791_v39 = vadd.f32 %v3343_v38, %v3318_v10  ;;  %v816_v38 = vadd.f32 %v3318_v10, %v3370_v63 }
 0x110   : > { %2904 = vmatmul.mubr.msk.f32.gmra.mrb[50].mxu1 %vm1009_vm1, %v953_v27  ;;  %v955_v37 = vmax.f32 %v721_v28, 0.0  ;;  %v3418_v56 = vpop.f32.mrb[21].mxu1  ;;  %v966_v28 = vmax.f32 %v776_v18, 0.0 }
 0x111   : > { %v954_v35 = vmax.f32 %v716_v32, 0.0  ;;  %v2807_v36 = vpop.f32.mrb[22].mxu0  ;;  %v781_v32 = vadd.f32 %v3335_v30, %v3318_v10 }
 0x112   : > { %v731_v40 = vadd.f32 %v2807_v36, %v3318_v10  ;;  %v725_v41 = vpop.f32.mrb[23].mxu0 }
 0x113   : > { %v726_v42 = vadd.f32 %v3318_v10, %v725_v41  ;;  %2906 = vmatprep.mubr.msk.f32.mxu1 %vm1009_vm1, %v954_v35  ;;  %v3423_v1 = vpop.f32.mrb[22].mxu1  ;;  %v967_v41 = vmax.f32 %v781_v32, 0.0 }
 0x114   : > { %2907 = vmatmul.mubr.msk.f32.gmra.mrb[52].mxu1 %vm1009_vm1, %v955_v37  ;;  %v957_v49 = vmax.f32 %v731_v40, 0.0  ;;  %v3426_v2 = vpop.f32.mrb[23].mxu1  ;;  %v968_v37 = vmax.f32 %v786_v29, 0.0  ;;  %v796_v40 = vadd.f32 %v3318_v10, %v3354_v47  ;;  %v801_v47 = vadd.f32 %v3351_v46, %v3318_v10 }
 0x115   : > { %v956_v45 = vmax.f32 %v726_v42, 0.0  ;;  %v2810_v48 = vpop.f32.mrb[24].mxu0  ;;  %v826_v46 = vadd.f32 %v3318_v10, %v3378_v7 }
 0x116   : > { %v741_v50 = vadd.f32 %v2810_v48, %v3318_v10  ;;  %v735_v51 = vpop.f32.mrb[25].mxu0  ;;  %v806_v48 = vadd.f32 %v3318_v10, %v3362_v55 }
 0x117   : > { %v736_v52 = vadd.f32 %v3318_v10, %v735_v51  ;;  %2909 = vmatprep.mubr.msk.f32.mxu1 %vm1009_vm1, %v956_v45  ;;  %v3431_v12 = vpop.f32.mrb[24].mxu1  ;;  %v970_v45 = vmax.f32 %v796_v40, 0.0  ;;  %v971_v51 = vmax.f32 %v801_v47, 0.0 }
 0x118   : > { %2910 = vmatmul.mubr.msk.f32.gmra.mrb[54].mxu1 %vm1009_vm1, %v957_v49  ;;  %v959_v59 = vmax.f32 %v741_v50, 0.0  ;;  %v3434_v13 = vpop.f32.mrb[25].mxu1  ;;  %v969_v49 = vmax.f32 %v791_v39, 0.0  ;;  %v972_v50 = vmax.f32 %v806_v48, 0.0 }
 0x119   : > { %v958_v57 = vmax.f32 %v736_v52, 0.0  ;;  %v2813_v58 = vpop.f32.mrb[26].mxu0  ;;  %v811_v52 = vadd.f32 %v3359_v54, %v3318_v10  ;;  %v836_v54 = vadd.f32 %v3318_v10, %v3386_v16 }
 0x11a   : > { %v751_v60 = vadd.f32 %v2813_v58, %v3318_v10  ;;  %v745_v61 = vpop.f32.mrb[27].mxu0  ;;  %v821_v58 = vadd.f32 %v3367_v62, %v3318_v10  ;;  %v846_v62 = vadd.f32 %v3318_v10, %v3394_v24 }
 0x11b   : > { %v746_v0 = vadd.f32 %v3318_v10, %v745_v61  ;;  %2912 = vmatprep.mubr.msk.f32.mxu1 %vm1009_vm1, %v958_v57  ;;  %v3441_v25 = vpop.f32.mrb[26].mxu1  ;;  %v974_v57 = vmax.f32 %v816_v38, 0.0  ;;  %v973_v55 = vmax.f32 %v811_v52, 0.0  ;;  %v978_v61 = vmax.f32 %v836_v54, 0.0 }
 0x11c   : > { %2913 = vmatmul.mubr.msk.f32.gmra.mrb[56].mxu1 %vm1009_vm1, %v959_v59  ;;  %v961_v5 = vmax.f32 %v751_v60, 0.0  ;;  %v3444_v26 = vpop.f32.mrb[27].mxu1  ;;  %v976_v59 = vmax.f32 %v826_v46, 0.0  ;;  %v975_v63 = vmax.f32 %v821_v58, 0.0  ;;  %v831_v60 = vadd.f32 %v3375_v6, %v3318_v10 }
 0x11d   : > { %v960_v3 = vmax.f32 %v746_v0, 0.0  ;;  %v2816_v4 = vpop.f32.mrb[28].mxu0  ;;  %v841_v0 = vadd.f32 %v3383_v15, %v3318_v10  ;;  %v856_v6 = vadd.f32 %v3318_v10, %v3402_v34  ;;  %v866_v15 = vadd.f32 %v3318_v10, %v3410_v44 }
 0x11e   : > { %v761_v8 = vadd.f32 %v2816_v4, %v3318_v10  ;;  %v755_v9 = vpop.f32.mrb[29].mxu0  ;;  %v977_v7 = vmax.f32 %v831_v60, 0.0  ;;  %v851_v4 = vadd.f32 %v3391_v23, %v3318_v10  ;;  %v876_v23 = vadd.f32 %v3318_v10, %v3418_v56 }
 0x11f   : > { %v756_v11 = vadd.f32 %v3318_v10, %v755_v9  ;;  %2915 = vmatprep.mubr.msk.f32.mxu1 %vm1009_vm1, %v960_v3  ;;  %v3451_v35 = vpop.f32.mrb[28].mxu1  ;;  %v980_v3 = vmax.f32 %v846_v62, 0.0  ;;  %v979_v16 = vmax.f32 %v841_v0, 0.0  ;;  %v984_v9 = vmax.f32 %v866_v15, 0.0 }
 0x120   : > { %2916 = vmatmul.mubr.msk.f32.gmra.mrb[58].mxu1 %vm1009_vm1, %v961_v5  ;;  %v963_v19 = vmax.f32 %v761_v8, 0.0  ;;  %v3454_v36 = vpop.f32.mrb[29].mxu1  ;;  %v982_v5 = vmax.f32 %v856_v6, 0.0  ;;  %v981_v24 = vmax.f32 %v851_v4, 0.0  ;;  %v861_v8 = vadd.f32 %v3399_v33, %v3318_v10 }
 0x121   : > { %v962_v14 = vmax.f32 %v756_v11, 0.0  ;;  %v2819_v17 = vpop.f32.mrb[30].mxu0  ;;  %v871_v11 = vadd.f32 %v3407_v43, %v3318_v10  ;;  %v886_v33 = vadd.f32 %v3318_v10, %v3426_v2  ;;  %v896_v43 = vadd.f32 %v3318_v10, %v3434_v13 }
 0x122   : > { %v771_v20 = vadd.f32 %v2819_v17, %v3318_v10  ;;  %v765_v21 = vpop.f32.mrb[31].mxu0  ;;  %v983_v34 = vmax.f32 %v861_v8, 0.0  ;;  %v881_v17 = vadd.f32 %v3415_v53, %v3318_v10  ;;  %v906_v53 = vadd.f32 %v3318_v10, %v3444_v26 }
 0x123   : > { %v766_v22 = vadd.f32 %v3318_v10, %v765_v21  ;;  %2918 = vmatprep.mubr.msk.f32.mxu1 %vm1009_vm1, %v962_v14  ;;  %v3461_v42 = vpop.f32.mrb[30].mxu1  ;;  %v986_v14 = vmax.f32 %v876_v23, 0.0  ;;  %v985_v44 = vmax.f32 %v871_v11, 0.0  ;;  %v988_v18 = vmax.f32 %v886_v33, 0.0 }
 0x124   : > { %2919 = vmatmul.mubr.msk.f32.gmra.mrb[60].mxu1 %vm1009_vm1, %v963_v19  ;;  %v965_v31 = vmax.f32 %v771_v20, 0.0  ;;  %v3464_v30 = vpop.f32.mrb[31].mxu1  ;;  %v987_v56 = vmax.f32 %v881_v17, 0.0  ;;  %v891_v19 = vadd.f32 %v3423_v1, %v3318_v10  ;;  %v990_v20 = vmax.f32 %v896_v43, 0.0 }
 0x125   : > { %v964_v27 = vmax.f32 %v766_v22, 0.0  ;;  %v901_v21 = vadd.f32 %v3431_v12, %v3318_v10  ;;  %v992_v22 = vmax.f32 %v906_v53, 0.0  ;;  %v916_v1 = vadd.f32 %v3318_v10, %v3454_v36 }
 0x126   : > { %v989_v2 = vmax.f32 %v891_v19, 0.0  ;;  %v926_v12 = vadd.f32 %v3318_v10, %v3464_v30  ;;  %v921_v29 = vadd.f32 %v3451_v35, %v3318_v10  ;;  %v3553_v35 = vld [vmem:[%s3894_s4] ss:$0 sm:$0xff] }
 0x127   : > { %2921 = vmatprep.mubr.msk.f32.mxu1 %vm1009_vm1, %v964_v27  ;;  %v991_v13 = vmax.f32 %v901_v21, 0.0  ;;  %v911_v27 = vadd.f32 %v3441_v25, %v3318_v10  ;;  %v931_v25 = vadd.f32 %v3461_v42, %v3318_v10 }
 0x128   : > { %2922 = vmatmul.mubr.msk.f32.gmra.mrb[62].mxu1 %vm1009_vm1, %v965_v31  ;;  %v996_v31 = vmax.f32 %v926_v12, 0.0  ;;  %v995_v32 = vmax.f32 %v921_v29, 0.0 }
 0x129   : > { %2924 = vmatprep.mubr.msk.f32.mxu1 %vm1009_vm1, %v966_v28  ;;  %v994_v28 = vmax.f32 %v916_v1, 0.0  ;;  %v993_v26 = vmax.f32 %v911_v27, 0.0  ;;  %v997_v36 = vmax.f32 %v931_v25, 0.0 }
 0x12c   : > { %2925 = vmatmul.mubr.msk.f32.gmra.mrb[64].mxu1 %vm1009_vm1, %v967_v41 }
 0x12d   : > { %2927 = vmatprep.mubr.msk.f32.mxu1 %vm1009_vm1, %v968_v37 }
 0x130   : > { %2928 = vmatmul.mubr.msk.f32.gmra.mrb[66].mxu1 %vm1009_vm1, %v969_v49 }
 0x131   : > { %2930 = vmatprep.mubr.msk.f32.mxu1 %vm1009_vm1, %v970_v45 }
 0x134   : > { %2931 = vmatmul.mubr.msk.f32.gmra.mrb[68].mxu1 %vm1009_vm1, %v971_v51 }
 0x135   : > { %2933 = vmatprep.mubr.msk.f32.mxu1 %vm1009_vm1, %v972_v50 }
 0x138   : > { %2934 = vmatmul.mubr.msk.f32.gmra.mrb[70].mxu1 %vm1009_vm1, %v973_v55 }
 0x139   : > { %2936 = vmatprep.mubr.msk.f32.mxu1 %vm1009_vm1, %v974_v57 }
 0x13c   : > { %2937 = vmatmul.mubr.msk.f32.gmra.mrb[72].mxu1 %vm1009_vm1, %v975_v63 }
 0x13d   : > { %2939 = vmatprep.mubr.msk.f32.mxu1 %vm1009_vm1, %v976_v59 }
 0x140   : > { %2940 = vmatmul.mubr.msk.f32.gmra.mrb[74].mxu1 %vm1009_vm1, %v977_v7 }
 0x141   : > { %2942 = vmatprep.mubr.msk.f32.mxu1 %vm1009_vm1, %v978_v61 }
 0x144   : > { %2943 = vmatmul.mubr.msk.f32.gmra.mrb[76].mxu1 %vm1009_vm1, %v979_v16 }
 0x145   : > { %2945 = vmatprep.mubr.msk.f32.mxu1 %vm1009_vm1, %v980_v3 }
 0x148   : > { %2946 = vmatmul.mubr.msk.f32.gmra.mrb[78].mxu1 %vm1009_vm1, %v981_v24 }
 0x149   : > { %2948 = vmatprep.mubr.msk.f32.mxu1 %vm1009_vm1, %v982_v5 }
 0x14c   : > { %2949 = vmatmul.mubr.msk.f32.gmra.mrb[80].mxu1 %vm1009_vm1, %v983_v34 }
 0x14d   : > { %2951 = vmatprep.mubr.msk.f32.mxu1 %vm1009_vm1, %v984_v9 }
 0x150   : > { %2952 = vmatmul.mubr.msk.f32.gmra.mrb[82].mxu1 %vm1009_vm1, %v985_v44 }
 0x151   : > { %2954 = vmatprep.mubr.msk.f32.mxu1 %vm1009_vm1, %v986_v14 }
 0x154   : > { %2955 = vmatmul.mubr.msk.f32.gmra.mrb[84].mxu1 %vm1009_vm1, %v987_v56 }
 0x155   : > { %2957 = vmatprep.mubr.msk.f32.mxu1 %vm1009_vm1, %v988_v18 }
 0x158   : > { %2958 = vmatmul.mubr.msk.f32.gmra.mrb[86].mxu1 %vm1009_vm1, %v989_v2 }
 0x159   : > { %2960 = vmatprep.mubr.msk.f32.mxu1 %vm1009_vm1, %v990_v20 }
 0x15c   : > { %2961 = vmatmul.mubr.msk.f32.gmra.mrb[88].mxu1 %vm1009_vm1, %v991_v13 }
 0x15d   : > { %2963 = vmatprep.mubr.msk.f32.mxu1 %vm1009_vm1, %v992_v22 }
 0x160   : > { %2964 = vmatmul.mubr.msk.f32.gmra.mrb[90].mxu1 %vm1009_vm1, %v993_v26 }
 0x161   : > { %2966 = vmatprep.mubr.msk.f32.mxu1 %vm1009_vm1, %v994_v28 }
 0x164   : > { %2967 = vmatmul.mubr.msk.f32.gmra.mrb[92].mxu1 %vm1009_vm1, %v995_v32 }
 0x165   : > { %2969 = vmatprep.mubr.msk.f32.mxu1 %vm1009_vm1, %v996_v31 }
 0x168   : > { %2970 = vmatmul.mubr.msk.f32.gmra.mrb[94].mxu1 %vm1009_vm1, %v997_v36 }
 0x1bf   : > { %v2878_v37 = vpop.f32.mrb[32].mxu1 }
 0x1c0   : > { %v1274_v40 = vadd.f32 %v2878_v37, %v3553_v35  ;;  %v1268_v41 = vpop.f32.mrb[33].mxu1 }
 0x1c1   : > { %v1269_v39 = vadd.f32 %v3553_v35, %v1268_v41 }
 0x1c2   : > { %v1588_v30 = vmax.f32 %v1274_v40, 0.0 }
 0x1c3   : > { %v1587_v10 = vmax.f32 %v1269_v39, 0.0  ;;  %v2881_v42 = vpop.f32.mrb[34].mxu1 }
 0x1c4   : > { %v1284_v45 = vadd.f32 %v2881_v42, %v3553_v35  ;;  %v1278_v48 = vpop.f32.mrb[35].mxu1 }
 0x1c5   : > { %v1279_v49 = vadd.f32 %v3553_v35, %v1278_v48  ;;  %2976 = vmatprep.mubr.msk.f32.mxu0 %vm1660_vm2, %v1587_v10 }
 0x1c6   : > { %2977 = vmatmul.mubr.msk.f32.vlgmr.msra.gmra.mrb[32].mxu0 %vm1660_vm2, %v1588_v30  ;;  %v1590_v38 = vmax.f32 %v1284_v45, 0.0 }
 0x1c7   : > { %v1589_v47 = vmax.f32 %v1279_v49, 0.0  ;;  %v2884_v50 = vpop.f32.mrb[36].mxu1 }
 0x1c8   : > { %v1294_v51 = vadd.f32 %v2884_v50, %v3553_v35  ;;  %v1288_v52 = vpop.f32.mrb[37].mxu1 }
 0x1c9   : > { %v1289_v57 = vadd.f32 %v3553_v35, %v1288_v52  ;;  %2979 = vmatprep.mubr.msk.f32.mxu0 %vm1660_vm2, %v1589_v47 }
 0x1ca   : > { %2980 = vmatmul.mubr.msk.f32.gmra.mrb[34].mxu0 %vm1660_vm2, %v1590_v38  ;;  %v1592_v58 = vmax.f32 %v1294_v51, 0.0 }
 0x1cb   : > { %v1591_v46 = vmax.f32 %v1289_v57, 0.0  ;;  %v2887_v55 = vpop.f32.mrb[38].mxu1 }
 0x1cc   : > { %v1304_v59 = vadd.f32 %v2887_v55, %v3553_v35  ;;  %v1298_v54 = vpop.f32.mrb[39].mxu1 }
 0x1cd   : > { %v1299_v63 = vadd.f32 %v3553_v35, %v1298_v54  ;;  %2982 = vmatprep.mubr.msk.f32.mxu0 %vm1660_vm2, %v1591_v46 }
 0x1ce   : > { %2983 = vmatmul.mubr.msk.f32.gmra.mrb[36].mxu0 %vm1660_vm2, %v1592_v58  ;;  %v1594_v62 = vmax.f32 %v1304_v59, 0.0 }
 0x1cf   : > { %v1593_v60 = vmax.f32 %v1299_v63, 0.0  ;;  %v2890_v61 = vpop.f32.mrb[40].mxu1 }
 0x1d0   : > { %v1314_v7 = vadd.f32 %v2890_v61, %v3553_v35  ;;  %v1308_v0 = vpop.f32.mrb[41].mxu1 }
 0x1d1   : > { %v1309_v3 = vadd.f32 %v3553_v35, %v1308_v0  ;;  %2985 = vmatprep.mubr.msk.f32.mxu0 %vm1660_vm2, %v1593_v60 }
 0x1d2   : > { %2986 = vmatmul.mubr.msk.f32.gmra.mrb[38].mxu0 %vm1660_vm2, %v1594_v62  ;;  %v1596_v4 = vmax.f32 %v1314_v7, 0.0 }
 0x1d3   : > { %v1595_v6 = vmax.f32 %v1309_v3, 0.0  ;;  %v2893_v16 = vpop.f32.mrb[42].mxu1 }
 0x1d4   : > { %v1324_v5 = vadd.f32 %v2893_v16, %v3553_v35  ;;  %v1318_v15 = vpop.f32.mrb[43].mxu1 }
 0x1d5   : > { %v1319_v24 = vadd.f32 %v3553_v35, %v1318_v15  ;;  %2988 = vmatprep.mubr.msk.f32.mxu0 %vm1660_vm2, %v1595_v6 }
 0x1d6   : > { %2989 = vmatmul.mubr.msk.f32.gmra.mrb[40].mxu0 %vm1660_vm2, %v1596_v4  ;;  %v1598_v23 = vmax.f32 %v1324_v5, 0.0 }
 0x1d7   : > { %v1597_v8 = vmax.f32 %v1319_v24, 0.0  ;;  %v2896_v9 = vpop.f32.mrb[44].mxu1 }
 0x1d8   : > { %v1334_v34 = vadd.f32 %v2896_v9, %v3553_v35  ;;  %v1328_v11 = vpop.f32.mrb[45].mxu1 }
 0x1d9   : > { %v1329_v14 = vadd.f32 %v3553_v35, %v1328_v11  ;;  %2991 = vmatprep.mubr.msk.f32.mxu0 %vm1660_vm2, %v1597_v8 }
 0x1da   : > { %2992 = vmatmul.mubr.msk.f32.gmra.mrb[42].mxu0 %vm1660_vm2, %v1598_v23  ;;  %v1600_v17 = vmax.f32 %v1334_v34, 0.0 }
 0x1db   : > { %v1599_v33 = vmax.f32 %v1329_v14, 0.0  ;;  %v2899_v44 = vpop.f32.mrb[46].mxu1 }
 0x1dc   : > { %v1344_v18 = vadd.f32 %v2899_v44, %v3553_v35  ;;  %v1338_v43 = vpop.f32.mrb[47].mxu1 }
 0x1dd   : > { %v1339_v56 = vadd.f32 %v3553_v35, %v1338_v43  ;;  %2994 = vmatprep.mubr.msk.f32.mxu0 %vm1660_vm2, %v1599_v33 }
 0x1de   : > { %2995 = vmatmul.mubr.msk.f32.gmra.mrb[44].mxu0 %vm1660_vm2, %v1600_v17  ;;  %v1602_v53 = vmax.f32 %v1344_v18, 0.0 }
 0x1df   : > { %v1601_v19 = vmax.f32 %v1339_v56, 0.0  ;;  %v2902_v20 = vpop.f32.mrb[48].mxu1 }
 0x1e0   : > { %v1354_v2 = vadd.f32 %v2902_v20, %v3553_v35  ;;  %v1348_v21 = vpop.f32.mrb[49].mxu1 }
 0x1e1   : > { %v1349_v22 = vadd.f32 %v3553_v35, %v1348_v21  ;;  %2997 = vmatprep.mubr.msk.f32.mxu0 %vm1660_vm2, %v1601_v19 }
 0x1e2   : > { %2998 = vmatmul.mubr.msk.f32.gmra.mrb[46].mxu0 %vm1660_vm2, %v1602_v53  ;;  %v1604_v27 = vmax.f32 %v1354_v2, 0.0 }
 0x1e3   : > { %v1603_v1 = vmax.f32 %v1349_v22, 0.0  ;;  %v2905_v13 = vpop.f32.mrb[50].mxu1 }
 0x1e4   : > { %v1364_v28 = vadd.f32 %v2905_v13, %v3553_v35  ;;  %v1358_v12 = vpop.f32.mrb[51].mxu1 }
 0x1e5   : > { %v1359_v26 = vadd.f32 %v3553_v35, %v1358_v12  ;;  %3000 = vmatprep.mubr.msk.f32.mxu0 %vm1660_vm2, %v1603_v1 }
 0x1e6   : > { %3001 = vmatmul.mubr.msk.f32.gmra.mrb[48].mxu0 %vm1660_vm2, %v1604_v27  ;;  %v1606_v32 = vmax.f32 %v1364_v28, 0.0 }
 0x1e7   : > { %v1605_v29 = vmax.f32 %v1359_v26, 0.0  ;;  %v2908_v31 = vpop.f32.mrb[52].mxu1 }
 0x1e8   : > { %v1374_v25 = vadd.f32 %v2908_v31, %v3553_v35  ;;  %v1368_v36 = vpop.f32.mrb[53].mxu1 }
 0x1e9   : > { %v1369_v37 = vadd.f32 %v3553_v35, %v1368_v36  ;;  %3003 = vmatprep.mubr.msk.f32.mxu0 %vm1660_vm2, %v1605_v29 }
 0x1ea   : > { %3004 = vmatmul.mubr.msk.f32.gmra.mrb[50].mxu0 %vm1660_vm2, %v1606_v32  ;;  %v1608_v39 = vmax.f32 %v1374_v25, 0.0 }
 0x1eb   : > { %v1607_v40 = vmax.f32 %v1369_v37, 0.0  ;;  %v2911_v41 = vpop.f32.mrb[54].mxu1 }
 0x1ec   : > { %v1384_v10 = vadd.f32 %v2911_v41, %v3553_v35  ;;  %v1378_v42 = vpop.f32.mrb[55].mxu1 }
 0x1ed   : > { %v1379_v30 = vadd.f32 %v3553_v35, %v1378_v42  ;;  %3006 = vmatprep.mubr.msk.f32.mxu0 %vm1660_vm2, %v1607_v40 }
 0x1ee   : > { %3007 = vmatmul.mubr.msk.f32.gmra.mrb[52].mxu0 %vm1660_vm2, %v1608_v39  ;;  %v1610_v49 = vmax.f32 %v1384_v10, 0.0 }
 0x1ef   : > { %v1609_v45 = vmax.f32 %v1379_v30, 0.0  ;;  %v2914_v48 = vpop.f32.mrb[56].mxu1 }
 0x1f0   : > { %v1394_v47 = vadd.f32 %v2914_v48, %v3553_v35  ;;  %v1388_v50 = vpop.f32.mrb[57].mxu1 }
 0x1f1   : > { %v1389_v38 = vadd.f32 %v3553_v35, %v1388_v50  ;;  %3009 = vmatprep.mubr.msk.f32.mxu0 %vm1660_vm2, %v1609_v45 }
 0x1f2   : > { %3010 = vmatmul.mubr.msk.f32.gmra.mrb[54].mxu0 %vm1660_vm2, %v1610_v49  ;;  %v1612_v57 = vmax.f32 %v1394_v47, 0.0 }
 0x1f3   : > { %v1611_v51 = vmax.f32 %v1389_v38, 0.0  ;;  %v2917_v52 = vpop.f32.mrb[58].mxu1 }
 0x1f4   : > { %v1404_v46 = vadd.f32 %v2917_v52, %v3553_v35  ;;  %v1398_v55 = vpop.f32.mrb[59].mxu1 }
 0x1f5   : > { %v1399_v58 = vadd.f32 %v3553_v35, %v1398_v55  ;;  %3012 = vmatprep.mubr.msk.f32.mxu0 %vm1660_vm2, %v1611_v51 }
 0x1f6   : > { %3013 = vmatmul.mubr.msk.f32.gmra.mrb[56].mxu0 %vm1660_vm2, %v1612_v57  ;;  %v1614_v63 = vmax.f32 %v1404_v46, 0.0 }
 0x1f7   : > { %v1613_v59 = vmax.f32 %v1399_v58, 0.0  ;;  %v2920_v54 = vpop.f32.mrb[60].mxu1 }
 0x1f8   : > { %v1414_v60 = vadd.f32 %v2920_v54, %v3553_v35  ;;  %v1408_v61 = vpop.f32.mrb[61].mxu1 }
 0x1f9   : > { %v1409_v62 = vadd.f32 %v3553_v35, %v1408_v61  ;;  %3015 = vmatprep.mubr.msk.f32.mxu0 %vm1660_vm2, %v1613_v59 }
 0x1fa   : > { %3016 = vmatmul.mubr.msk.f32.gmra.mrb[58].mxu0 %vm1660_vm2, %v1614_v63  ;;  %v1616_v3 = vmax.f32 %v1414_v60, 0.0 }
 0x1fb   : > { %v1615_v7 = vmax.f32 %v1409_v62, 0.0  ;;  %v2923_v0 = vpop.f32.mrb[62].mxu1 }
 0x1fc   : > { %v1424_v6 = vadd.f32 %v2923_v0, %v3553_v35  ;;  %v1418_v16 = vpop.f32.mrb[63].mxu1 }
 0x1fd   : > { %v1419_v4 = vadd.f32 %v3553_v35, %v1418_v16  ;;  %3018 = vmatprep.mubr.msk.f32.mxu0 %vm1660_vm2, %v1615_v7 }
 0x1fe   : > { %3019 = vmatmul.mubr.msk.f32.gmra.mrb[60].mxu0 %vm1660_vm2, %v1616_v3  ;;  %v1618_v24 = vmax.f32 %v1424_v6, 0.0 }
 0x1ff   : > { %v1617_v5 = vmax.f32 %v1419_v4, 0.0  ;;  %v2926_v15 = vpop.f32.mrb[64].mxu1 }
 0x200   : > { %v1434_v8 = vadd.f32 %v2926_v15, %v3553_v35  ;;  %v1428_v9 = vpop.f32.mrb[65].mxu1 }
 0x201   : > { %v1429_v23 = vadd.f32 %v3553_v35, %v1428_v9  ;;  %3021 = vmatprep.mubr.msk.f32.mxu0 %vm1660_vm2, %v1617_v5 }
 0x202   : > { %3022 = vmatmul.mubr.msk.f32.gmra.mrb[62].mxu0 %vm1660_vm2, %v1618_v24  ;;  %v1620_v14 = vmax.f32 %v1434_v8, 0.0 }
 0x203   : > { %v1619_v34 = vmax.f32 %v1429_v23, 0.0  ;;  %v2929_v11 = vpop.f32.mrb[66].mxu1 }
 0x204   : > { %v1444_v33 = vadd.f32 %v2929_v11, %v3553_v35  ;;  %v1438_v44 = vpop.f32.mrb[67].mxu1 }
 0x205   : > { %v1439_v17 = vadd.f32 %v3553_v35, %v1438_v44  ;;  %3024 = vmatprep.mubr.msk.f32.mxu0 %vm1660_vm2, %v1619_v34 }
 0x206   : > { %3025 = vmatmul.mubr.msk.f32.gmra.mrb[64].mxu0 %vm1660_vm2, %v1620_v14  ;;  %v1622_v56 = vmax.f32 %v1444_v33, 0.0 }
 0x207   : > { %v1621_v18 = vmax.f32 %v1439_v17, 0.0  ;;  %v2932_v43 = vpop.f32.mrb[68].mxu1 }
 0x208   : > { %v1454_v19 = vadd.f32 %v2932_v43, %v3553_v35  ;;  %v1448_v20 = vpop.f32.mrb[69].mxu1 }
 0x209   : > { %v1449_v53 = vadd.f32 %v3553_v35, %v1448_v20  ;;  %3027 = vmatprep.mubr.msk.f32.mxu0 %vm1660_vm2, %v1621_v18 }
 0x20a   : > { %3028 = vmatmul.mubr.msk.f32.gmra.mrb[66].mxu0 %vm1660_vm2, %v1622_v56  ;;  %v1624_v22 = vmax.f32 %v1454_v19, 0.0 }
 0x20b   : > { %v1623_v2 = vmax.f32 %v1449_v53, 0.0  ;;  %v2935_v21 = vpop.f32.mrb[70].mxu1 }
 0x20c   : > { %v1464_v1 = vadd.f32 %v2935_v21, %v3553_v35  ;;  %v1458_v13 = vpop.f32.mrb[71].mxu1 }
 0x20d   : > { %v1459_v27 = vadd.f32 %v3553_v35, %v1458_v13  ;;  %3030 = vmatprep.mubr.msk.f32.mxu0 %vm1660_vm2, %v1623_v2 }
 0x20e   : > { %3031 = vmatmul.mubr.msk.f32.gmra.mrb[68].mxu0 %vm1660_vm2, %v1624_v22  ;;  %v1626_v26 = vmax.f32 %v1464_v1, 0.0 }
 0x20f   : > { %v1625_v28 = vmax.f32 %v1459_v27, 0.0  ;;  %v2938_v12 = vpop.f32.mrb[72].mxu1 }
 0x210   : > { %v1474_v29 = vadd.f32 %v2938_v12, %v3553_v35  ;;  %v1468_v31 = vpop.f32.mrb[73].mxu1 }
 0x211   : > { %v1469_v32 = vadd.f32 %v3553_v35, %v1468_v31  ;;  %3033 = vmatprep.mubr.msk.f32.mxu0 %vm1660_vm2, %v1625_v28 }
 0x212   : > { %3034 = vmatmul.mubr.msk.f32.gmra.mrb[70].mxu0 %vm1660_vm2, %v1626_v26  ;;  %v1628_v37 = vmax.f32 %v1474_v29, 0.0 }
 0x213   : > { %v1627_v25 = vmax.f32 %v1469_v32, 0.0  ;;  %v2941_v36 = vpop.f32.mrb[74].mxu1 }
 0x214   : > { %v1484_v40 = vadd.f32 %v2941_v36, %v3553_v35  ;;  %v1478_v41 = vpop.f32.mrb[75].mxu1 }
 0x215   : > { %v1479_v39 = vadd.f32 %v3553_v35, %v1478_v41  ;;  %3036 = vmatprep.mubr.msk.f32.mxu0 %vm1660_vm2, %v1627_v25 }
 0x216   : > { %3037 = vmatmul.mubr.msk.f32.gmra.mrb[72].mxu0 %vm1660_vm2, %v1628_v37  ;;  %v1630_v30 = vmax.f32 %v1484_v40, 0.0 }
 0x217   : > { %v1629_v10 = vmax.f32 %v1479_v39, 0.0  ;;  %v2944_v42 = vpop.f32.mrb[76].mxu1  ;;  %v3686_v39 = vld [vmem:[%s3896_s6] ss:$0 sm:$0xff] }
 0x218   : > { %v1494_v45 = vadd.f32 %v2944_v42, %v3553_v35  ;;  %v1488_v48 = vpop.f32.mrb[77].mxu1 }
 0x219   : > { %v1489_v49 = vadd.f32 %v3553_v35, %v1488_v48  ;;  %3039 = vmatprep.mubr.msk.f32.mxu0 %vm1660_vm2, %v1629_v10 }
 0x21a   : > { %3040 = vmatmul.mubr.msk.f32.gmra.mrb[74].mxu0 %vm1660_vm2, %v1630_v30  ;;  %v1632_v38 = vmax.f32 %v1494_v45, 0.0 }
 0x21b   : > { %v1631_v47 = vmax.f32 %v1489_v49, 0.0  ;;  %v2947_v50 = vpop.f32.mrb[78].mxu1 }
 0x21c   : > { %v1504_v51 = vadd.f32 %v2947_v50, %v3553_v35  ;;  %v1498_v52 = vpop.f32.mrb[79].mxu1 }
 0x21d   : > { %v1499_v57 = vadd.f32 %v3553_v35, %v1498_v52  ;;  %3042 = vmatprep.mubr.msk.f32.mxu0 %vm1660_vm2, %v1631_v47 }
 0x21e   : > { %3043 = vmatmul.mubr.msk.f32.gmra.mrb[76].mxu0 %vm1660_vm2, %v1632_v38  ;;  %v1634_v58 = vmax.f32 %v1504_v51, 0.0 }
 0x21f   : > { %v1633_v46 = vmax.f32 %v1499_v57, 0.0  ;;  %v2950_v55 = vpop.f32.mrb[80].mxu1 }
 0x220   : > { %v1514_v59 = vadd.f32 %v2950_v55, %v3553_v35  ;;  %v1508_v54 = vpop.f32.mrb[81].mxu1 }
 0x221   : > { %v1509_v63 = vadd.f32 %v3553_v35, %v1508_v54  ;;  %3045 = vmatprep.mubr.msk.f32.mxu0 %vm1660_vm2, %v1633_v46 }
 0x222   : > { %3046 = vmatmul.mubr.msk.f32.gmra.mrb[78].mxu0 %vm1660_vm2, %v1634_v58  ;;  %v1636_v62 = vmax.f32 %v1514_v59, 0.0 }
 0x223   : > { %v1635_v60 = vmax.f32 %v1509_v63, 0.0  ;;  %v2953_v61 = vpop.f32.mrb[82].mxu1 }
 0x224   : > { %v1524_v7 = vadd.f32 %v2953_v61, %v3553_v35  ;;  %v1518_v0 = vpop.f32.mrb[83].mxu1 }
 0x225   : > { %v1519_v3 = vadd.f32 %v3553_v35, %v1518_v0  ;;  %3048 = vmatprep.mubr.msk.f32.mxu0 %vm1660_vm2, %v1635_v60 }
 0x226   : > { %3049 = vmatmul.mubr.msk.f32.gmra.mrb[80].mxu0 %vm1660_vm2, %v1636_v62  ;;  %v1638_v4 = vmax.f32 %v1524_v7, 0.0 }
 0x227   : > { %v1637_v6 = vmax.f32 %v1519_v3, 0.0  ;;  %v2956_v16 = vpop.f32.mrb[84].mxu1 }
 0x228   : > { %v1534_v5 = vadd.f32 %v2956_v16, %v3553_v35  ;;  %v1528_v15 = vpop.f32.mrb[85].mxu1 }
 0x229   : > { %v1529_v24 = vadd.f32 %v3553_v35, %v1528_v15  ;;  %3051 = vmatprep.mubr.msk.f32.mxu0 %vm1660_vm2, %v1637_v6 }
 0x22a   : > { %3052 = vmatmul.mubr.msk.f32.gmra.mrb[82].mxu0 %vm1660_vm2, %v1638_v4  ;;  %v1640_v23 = vmax.f32 %v1534_v5, 0.0 }
 0x22b   : > { %v1639_v8 = vmax.f32 %v1529_v24, 0.0  ;;  %v2959_v9 = vpop.f32.mrb[86].mxu1 }
 0x22c   : > { %v1544_v34 = vadd.f32 %v2959_v9, %v3553_v35  ;;  %v1538_v11 = vpop.f32.mrb[87].mxu1 }
 0x22d   : > { %v1539_v14 = vadd.f32 %v3553_v35, %v1538_v11  ;;  %3054 = vmatprep.mubr.msk.f32.mxu0 %vm1660_vm2, %v1639_v8 }
 0x22e   : > { %3055 = vmatmul.mubr.msk.f32.gmra.mrb[84].mxu0 %vm1660_vm2, %v1640_v23  ;;  %v1642_v17 = vmax.f32 %v1544_v34, 0.0 }
 0x22f   : > { %v1641_v33 = vmax.f32 %v1539_v14, 0.0  ;;  %v2962_v44 = vpop.f32.mrb[88].mxu1 }
 0x230   : > { %v1554_v18 = vadd.f32 %v2962_v44, %v3553_v35  ;;  %v1548_v43 = vpop.f32.mrb[89].mxu1 }
 0x231   : > { %v1549_v56 = vadd.f32 %v3553_v35, %v1548_v43  ;;  %3057 = vmatprep.mubr.msk.f32.mxu0 %vm1660_vm2, %v1641_v33 }
 0x232   : > { %3058 = vmatmul.mubr.msk.f32.gmra.mrb[86].mxu0 %vm1660_vm2, %v1642_v17  ;;  %v1644_v53 = vmax.f32 %v1554_v18, 0.0 }
 0x233   : > { %v1643_v19 = vmax.f32 %v1549_v56, 0.0  ;;  %v2965_v20 = vpop.f32.mrb[90].mxu1 }
 0x234   : > { %v1564_v2 = vadd.f32 %v2965_v20, %v3553_v35  ;;  %v1558_v21 = vpop.f32.mrb[91].mxu1 }
 0x235   : > { %v1559_v22 = vadd.f32 %v3553_v35, %v1558_v21  ;;  %3060 = vmatprep.mubr.msk.f32.mxu0 %vm1660_vm2, %v1643_v19 }
 0x236   : > { %3061 = vmatmul.mubr.msk.f32.gmra.mrb[88].mxu0 %vm1660_vm2, %v1644_v53  ;;  %v1646_v27 = vmax.f32 %v1564_v2, 0.0 }
 0x237   : > { %v1645_v1 = vmax.f32 %v1559_v22, 0.0  ;;  %v2968_v13 = vpop.f32.mrb[92].mxu1 }
 0x238   : > { %v1574_v28 = vadd.f32 %v2968_v13, %v3553_v35  ;;  %v1568_v12 = vpop.f32.mrb[93].mxu1 }
 0x239   : > { %v1569_v26 = vadd.f32 %v3553_v35, %v1568_v12  ;;  %3063 = vmatprep.mubr.msk.f32.mxu0 %vm1660_vm2, %v1645_v1 }
 0x23a   : > { %3064 = vmatmul.mubr.msk.f32.gmra.mrb[90].mxu0 %vm1660_vm2, %v1646_v27  ;;  %v1648_v32 = vmax.f32 %v1574_v28, 0.0 }
 0x23b   : > { %v1647_v29 = vmax.f32 %v1569_v26, 0.0  ;;  %v2971_v31 = vpop.f32.mrb[94].mxu1 }
 0x23c   : > { %v1584_v25 = vadd.f32 %v2971_v31, %v3553_v35  ;;  %v1578_v36 = vpop.f32.mrb[95].mxu1 }
 0x23d   : > { %v1579_v37 = vadd.f32 %v3553_v35, %v1578_v36  ;;  %3066 = vmatprep.mubr.msk.f32.mxu0 %vm1660_vm2, %v1647_v29 }
 0x23e   : > { %3067 = vmatmul.mubr.msk.f32.gmra.mrb[92].mxu0 %vm1660_vm2, %v1648_v32  ;;  %v1650_v41 = vmax.f32 %v1584_v25, 0.0 }
 0x23f   : > { %v1649_v40 = vmax.f32 %v1579_v37, 0.0 }
 0x241   : > { %3069 = vmatprep.mubr.msk.f32.mxu0 %vm1660_vm2, %v1649_v40 }
 0x242   : > { %3070 = vmatmul.mubr.msk.f32.gmra.mrb[94].mxu0 %vm1660_vm2, %v1650_v41 }
 0x299   : > { %v2978_v35 = vpop.f32.mrb[32].mxu0 }
 0x29a   : > { %v1925_v10 = vadd.f32 %v2978_v35, %v3686_v39  ;;  %v1919_v42 = vpop.f32.mrb[33].mxu0 }
 0x29b   : > { %v1920_v30 = vadd.f32 %v3686_v39, %v1919_v42 }
 0x29c   : > { %2240 = vst.msk [vmem:[%s3693_s13 + $0x8] sm:$0xff] %vm2238_vm3, %v1925_v10 }
 0x29d   : > { %2239 = vst.msk [vmem:[%s3693_s13] sm:$0xff] %vm2238_vm3, %v1920_v30  ;;  %v2981_v45 = vpop.f32.mrb[34].mxu0 }
 0x29e   : > { %v1935_v48 = vadd.f32 %v2981_v45, %v3686_v39  ;;  %v1929_v49 = vpop.f32.mrb[35].mxu0 }
 0x29f   : > { %v1930_v47 = vadd.f32 %v3686_v39, %v1929_v49 }
 0x2a0   : > { %2242 = vst.msk [vmem:[%s3693_s13 + $0x18] sm:$0xff] %vm2238_vm3, %v1935_v48 }
 0x2a1   : > { %2241 = vst.msk [vmem:[%s3693_s13 + $0x10] sm:$0xff] %vm2238_vm3, %v1930_v47  ;;  %v2984_v50 = vpop.f32.mrb[36].mxu0 }
 0x2a2   : > { %v1945_v38 = vadd.f32 %v2984_v50, %v3686_v39  ;;  %v1939_v51 = vpop.f32.mrb[37].mxu0 }
 0x2a3   : > { %v1940_v52 = vadd.f32 %v3686_v39, %v1939_v51 }
 0x2a4   : > { %2244 = vst.msk [vmem:[%s3693_s13 + $0x28] sm:$0xff] %vm2238_vm3, %v1945_v38 }
 0x2a5   : > { %2243 = vst.msk [vmem:[%s3693_s13 + $0x20] sm:$0xff] %vm2238_vm3, %v1940_v52  ;;  %v2987_v57 = vpop.f32.mrb[38].mxu0 }
 0x2a6   : > { %v1955_v46 = vadd.f32 %v2987_v57, %v3686_v39  ;;  %v1949_v55 = vpop.f32.mrb[39].mxu0 }
 0x2a7   : > { %v1950_v58 = vadd.f32 %v3686_v39, %v1949_v55 }
 0x2a8   : > { %2246 = vst.msk [vmem:[%s3693_s13 + $0x38] sm:$0xff] %vm2238_vm3, %v1955_v46 }
 0x2a9   : > { %2245 = vst.msk [vmem:[%s3693_s13 + $0x30] sm:$0xff] %vm2238_vm3, %v1950_v58  ;;  %v2990_v59 = vpop.f32.mrb[40].mxu0 }
 0x2aa   : > { %v1965_v54 = vadd.f32 %v2990_v59, %v3686_v39  ;;  %v1959_v63 = vpop.f32.mrb[41].mxu0 }
 0x2ab   : > { %v1960_v60 = vadd.f32 %v3686_v39, %v1959_v63 }
 0x2ac   : > { %2248 = vst.msk [vmem:[%s3693_s13 + $0x48] sm:$0xff] %vm2238_vm3, %v1965_v54 }
 0x2ad   : > { %2247 = vst.msk [vmem:[%s3693_s13 + $0x40] sm:$0xff] %vm2238_vm3, %v1960_v60  ;;  %v2993_v61 = vpop.f32.mrb[42].mxu0 }
 0x2ae   : > { %v1975_v62 = vadd.f32 %v2993_v61, %v3686_v39  ;;  %v1969_v7 = vpop.f32.mrb[43].mxu0 }
 0x2af   : > { %v1970_v0 = vadd.f32 %v3686_v39, %v1969_v7 }
 0x2b0   : > { %2250 = vst.msk [vmem:[%s3693_s13 + $0x58] sm:$0xff] %vm2238_vm3, %v1975_v62 }
 0x2b1   : > { %2249 = vst.msk [vmem:[%s3693_s13 + $0x50] sm:$0xff] %vm2238_vm3, %v1970_v0  ;;  %v2996_v3 = vpop.f32.mrb[44].mxu0 }
 0x2b2   : > { %v1985_v6 = vadd.f32 %v2996_v3, %v3686_v39  ;;  %v1979_v16 = vpop.f32.mrb[45].mxu0 }
 0x2b3   : > { %v1980_v4 = vadd.f32 %v3686_v39, %v1979_v16 }
 0x2b4   : > { %2252 = vst.msk [vmem:[%s3693_s13 + $0x68] sm:$0xff] %vm2238_vm3, %v1985_v6 }
 0x2b5   : > { %2251 = vst.msk [vmem:[%s3693_s13 + $0x60] sm:$0xff] %vm2238_vm3, %v1980_v4  ;;  %v2999_v5 = vpop.f32.mrb[46].mxu0 }
 0x2b6   : > { %v1995_v15 = vadd.f32 %v2999_v5, %v3686_v39  ;;  %v1989_v24 = vpop.f32.mrb[47].mxu0 }
 0x2b7   : > { %v1990_v8 = vadd.f32 %v3686_v39, %v1989_v24 }
 0x2b8   : > { %2254 = vst.msk [vmem:[%s3693_s13 + $0x78] sm:$0xff] %vm2238_vm3, %v1995_v15 }
 0x2b9   : > { %2253 = vst.msk [vmem:[%s3693_s13 + $0x70] sm:$0xff] %vm2238_vm3, %v1990_v8  ;;  %v3002_v9 = vpop.f32.mrb[48].mxu0 }
 0x2ba   : > { %v2005_v23 = vadd.f32 %v3002_v9, %v3686_v39  ;;  %v1999_v34 = vpop.f32.mrb[49].mxu0 }
 0x2bb   : > { %v2000_v11 = vadd.f32 %v3686_v39, %v1999_v34 }
 0x2bc   : > { %2256 = vst.msk [vmem:[%s3693_s13 + $0x88] sm:$0xff] %vm2238_vm3, %v2005_v23 }
 0x2bd   : > { %2255 = vst.msk [vmem:[%s3693_s13 + $0x80] sm:$0xff] %vm2238_vm3, %v2000_v11  ;;  %v3005_v14 = vpop.f32.mrb[50].mxu0 }
 0x2be   : > { %v2015_v33 = vadd.f32 %v3005_v14, %v3686_v39  ;;  %v2009_v44 = vpop.f32.mrb[51].mxu0 }
 0x2bf   : > { %v2010_v17 = vadd.f32 %v3686_v39, %v2009_v44 }
 0x2c0   : > { %2258 = vst.msk [vmem:[%s3693_s13 + $0x98] sm:$0xff] %vm2238_vm3, %v2015_v33 }
 0x2c1   : > { %2257 = vst.msk [vmem:[%s3693_s13 + $0x90] sm:$0xff] %vm2238_vm3, %v2010_v17  ;;  %v3008_v18 = vpop.f32.mrb[52].mxu0 }
 0x2c2   : > { %v2025_v43 = vadd.f32 %v3008_v18, %v3686_v39  ;;  %v2019_v56 = vpop.f32.mrb[53].mxu0 }
 0x2c3   : > { %v2020_v19 = vadd.f32 %v3686_v39, %v2019_v56 }
 0x2c4   : > { %2260 = vst.msk [vmem:[%s3693_s13 + $0xa8] sm:$0xff] %vm2238_vm3, %v2025_v43 }
 0x2c5   : > { %2259 = vst.msk [vmem:[%s3693_s13 + $0xa0] sm:$0xff] %vm2238_vm3, %v2020_v19  ;;  %v3011_v20 = vpop.f32.mrb[54].mxu0 }
 0x2c6   : > { %v2035_v53 = vadd.f32 %v3011_v20, %v3686_v39  ;;  %v2029_v2 = vpop.f32.mrb[55].mxu0 }
 0x2c7   : > { %v2030_v21 = vadd.f32 %v3686_v39, %v2029_v2 }
 0x2c8   : > { %2262 = vst.msk [vmem:[%s3693_s13 + $0xb8] sm:$0xff] %vm2238_vm3, %v2035_v53 }
 0x2c9   : > { %2261 = vst.msk [vmem:[%s3693_s13 + $0xb0] sm:$0xff] %vm2238_vm3, %v2030_v21  ;;  %v3014_v22 = vpop.f32.mrb[56].mxu0 }
 0x2ca   : > { %v2045_v1 = vadd.f32 %v3014_v22, %v3686_v39  ;;  %v2039_v13 = vpop.f32.mrb[57].mxu0 }
 0x2cb   : > { %v2040_v27 = vadd.f32 %v3686_v39, %v2039_v13 }
 0x2cc   : > { %2264 = vst.msk [vmem:[%s3693_s13 + $0xc8] sm:$0xff] %vm2238_vm3, %v2045_v1 }
 0x2cd   : > { %2263 = vst.msk [vmem:[%s3693_s13 + $0xc0] sm:$0xff] %vm2238_vm3, %v2040_v27  ;;  %v3017_v28 = vpop.f32.mrb[58].mxu0 }
 0x2ce   : > { %v2055_v12 = vadd.f32 %v3017_v28, %v3686_v39  ;;  %v2049_v26 = vpop.f32.mrb[59].mxu0 }
 0x2cf   : > { %v2050_v29 = vadd.f32 %v3686_v39, %v2049_v26 }
 0x2d0   : > { %2266 = vst.msk [vmem:[%s3693_s13 + $0xd8] sm:$0xff] %vm2238_vm3, %v2055_v12 }
 0x2d1   : > { %2265 = vst.msk [vmem:[%s3693_s13 + $0xd0] sm:$0xff] %vm2238_vm3, %v2050_v29  ;;  %v3020_v31 = vpop.f32.mrb[60].mxu0 }
 0x2d2   : > { %v2065_v32 = vadd.f32 %v3020_v31, %v3686_v39  ;;  %v2059_v25 = vpop.f32.mrb[61].mxu0 }
 0x2d3   : > { %v2060_v36 = vadd.f32 %v3686_v39, %v2059_v25 }
 0x2d4   : > { %2268 = vst.msk [vmem:[%s3693_s13 + $0xe8] sm:$0xff] %vm2238_vm3, %v2065_v32 }
 0x2d5   : > { %2267 = vst.msk [vmem:[%s3693_s13 + $0xe0] sm:$0xff] %vm2238_vm3, %v2060_v36  ;;  %v3023_v37 = vpop.f32.mrb[62].mxu0 }
 0x2d6   : > { %v2075_v40 = vadd.f32 %v3023_v37, %v3686_v39  ;;  %v2069_v41 = vpop.f32.mrb[63].mxu0 }
 0x2d7   : > { %v2070_v35 = vadd.f32 %v3686_v39, %v2069_v41 }
 0x2d8   : > { %2270 = vst.msk [vmem:[%s3693_s13 + $0xf8] sm:$0xff] %vm2238_vm3, %v2075_v40 }
 0x2d9   : > { %2269 = vst.msk [vmem:[%s3693_s13 + $0xf0] sm:$0xff] %vm2238_vm3, %v2070_v35  ;;  %v3026_v10 = vpop.f32.mrb[64].mxu0 }
 0x2da   : > { %v2085_v42 = vadd.f32 %v3026_v10, %v3686_v39  ;;  %v2079_v30 = vpop.f32.mrb[65].mxu0 }
 0x2db   : > { %v2080_v45 = vadd.f32 %v3686_v39, %v2079_v30 }
 0x2dc   : > { %2272 = vst.msk [vmem:[%s3693_s13 + $0x108] sm:$0xff] %vm2238_vm3, %v2085_v42 }
 0x2dd   : > { %2271 = vst.msk [vmem:[%s3693_s13 + $0x100] sm:$0xff] %vm2238_vm3, %v2080_v45  ;;  %v3029_v48 = vpop.f32.mrb[66].mxu0 }
 0x2de   : > { %v2095_v49 = vadd.f32 %v3029_v48, %v3686_v39  ;;  %v2089_v47 = vpop.f32.mrb[67].mxu0 }
 0x2df   : > { %v2090_v50 = vadd.f32 %v3686_v39, %v2089_v47 }
 0x2e0   : > { %2274 = vst.msk [vmem:[%s3693_s13 + $0x118] sm:$0xff] %vm2238_vm3, %v2095_v49 }
 0x2e1   : > { %2273 = vst.msk [vmem:[%s3693_s13 + $0x110] sm:$0xff] %vm2238_vm3, %v2090_v50  ;;  %v3032_v38 = vpop.f32.mrb[68].mxu0 }
 0x2e2   : > { %v2105_v51 = vadd.f32 %v3032_v38, %v3686_v39  ;;  %v2099_v52 = vpop.f32.mrb[69].mxu0 }
 0x2e3   : > { %v2100_v57 = vadd.f32 %v3686_v39, %v2099_v52 }
 0x2e4   : > { %2276 = vst.msk [vmem:[%s3693_s13 + $0x128] sm:$0xff] %vm2238_vm3, %v2105_v51 }
 0x2e5   : > { %2275 = vst.msk [vmem:[%s3693_s13 + $0x120] sm:$0xff] %vm2238_vm3, %v2100_v57  ;;  %v3035_v46 = vpop.f32.mrb[70].mxu0 }
 0x2e6   : > { %v2115_v55 = vadd.f32 %v3035_v46, %v3686_v39  ;;  %v2109_v58 = vpop.f32.mrb[71].mxu0 }
 0x2e7   : > { %v2110_v59 = vadd.f32 %v3686_v39, %v2109_v58 }
 0x2e8   : > { %2278 = vst.msk [vmem:[%s3693_s13 + $0x138] sm:$0xff] %vm2238_vm3, %v2115_v55 }
 0x2e9   : > { %2277 = vst.msk [vmem:[%s3693_s13 + $0x130] sm:$0xff] %vm2238_vm3, %v2110_v59  ;;  %v3038_v54 = vpop.f32.mrb[72].mxu0 }
 0x2ea   : > { %v2125_v63 = vadd.f32 %v3038_v54, %v3686_v39  ;;  %v2119_v60 = vpop.f32.mrb[73].mxu0 }
 0x2eb   : > { %v2120_v61 = vadd.f32 %v3686_v39, %v2119_v60 }
 0x2ec   : > { %2280 = vst.msk [vmem:[%s3693_s13 + $0x148] sm:$0xff] %vm2238_vm3, %v2125_v63 }
 0x2ed   : > { %2279 = vst.msk [vmem:[%s3693_s13 + $0x140] sm:$0xff] %vm2238_vm3, %v2120_v61  ;;  %v3041_v62 = vpop.f32.mrb[74].mxu0 }
 0x2ee   : > { %v2135_v7 = vadd.f32 %v3041_v62, %v3686_v39  ;;  %v2129_v0 = vpop.f32.mrb[75].mxu0 }
 0x2ef   : > { %v2130_v3 = vadd.f32 %v3686_v39, %v2129_v0 }
 0x2f0   : > { %2282 = vst.msk [vmem:[%s3693_s13 + $0x158] sm:$0xff] %vm2238_vm3, %v2135_v7 }
 0x2f1   : > { %2281 = vst.msk [vmem:[%s3693_s13 + $0x150] sm:$0xff] %vm2238_vm3, %v2130_v3  ;;  %v3044_v6 = vpop.f32.mrb[76].mxu0 }
 0x2f2   : > { %v2145_v16 = vadd.f32 %v3044_v6, %v3686_v39  ;;  %v2139_v4 = vpop.f32.mrb[77].mxu0 }
 0x2f3   : > { %v2140_v5 = vadd.f32 %v3686_v39, %v2139_v4 }
 0x2f4   : > { %2284 = vst.msk [vmem:[%s3693_s13 + $0x168] sm:$0xff] %vm2238_vm3, %v2145_v16 }
 0x2f5   : > { %2283 = vst.msk [vmem:[%s3693_s13 + $0x160] sm:$0xff] %vm2238_vm3, %v2140_v5  ;;  %v3047_v15 = vpop.f32.mrb[78].mxu0 }
 0x2f6   : > { %v2155_v24 = vadd.f32 %v3047_v15, %v3686_v39  ;;  %v2149_v8 = vpop.f32.mrb[79].mxu0 }
 0x2f7   : > { %v2150_v9 = vadd.f32 %v3686_v39, %v2149_v8 }
 0x2f8   : > { %2286 = vst.msk [vmem:[%s3693_s13 + $0x178] sm:$0xff] %vm2238_vm3, %v2155_v24 }
 0x2f9   : > { %2285 = vst.msk [vmem:[%s3693_s13 + $0x170] sm:$0xff] %vm2238_vm3, %v2150_v9  ;;  %v3050_v23 = vpop.f32.mrb[80].mxu0 }
 0x2fa   : > { %v2165_v34 = vadd.f32 %v3050_v23, %v3686_v39  ;;  %v2159_v11 = vpop.f32.mrb[81].mxu0 }
 0x2fb   : > { %v2160_v14 = vadd.f32 %v3686_v39, %v2159_v11 }
 0x2fc   : > { %2288 = vst.msk [vmem:[%s3693_s13 + $0x188] sm:$0xff] %vm2238_vm3, %v2165_v34 }
 0x2fd   : > { %2287 = vst.msk [vmem:[%s3693_s13 + $0x180] sm:$0xff] %vm2238_vm3, %v2160_v14  ;;  %v3053_v33 = vpop.f32.mrb[82].mxu0 }
 0x2fe   : > { %v2175_v44 = vadd.f32 %v3053_v33, %v3686_v39  ;;  %v2169_v17 = vpop.f32.mrb[83].mxu0 }
 0x2ff   : > { %v2170_v18 = vadd.f32 %v3686_v39, %v2169_v17 }
 0x300   : > { %2290 = vst.msk [vmem:[%s3693_s13 + $0x198] sm:$0xff] %vm2238_vm3, %v2175_v44 }
 0x301   : > { %2289 = vst.msk [vmem:[%s3693_s13 + $0x190] sm:$0xff] %vm2238_vm3, %v2170_v18  ;;  %v3056_v43 = vpop.f32.mrb[84].mxu0 }
 0x302   : > { %v2185_v56 = vadd.f32 %v3056_v43, %v3686_v39  ;;  %v2179_v19 = vpop.f32.mrb[85].mxu0 }
 0x303   : > { %v2180_v20 = vadd.f32 %v3686_v39, %v2179_v19 }
 0x304   : > { %2292 = vst.msk [vmem:[%s3693_s13 + $0x1a8] sm:$0xff] %vm2238_vm3, %v2185_v56 }
 0x305   : > { %2291 = vst.msk [vmem:[%s3693_s13 + $0x1a0] sm:$0xff] %vm2238_vm3, %v2180_v20  ;;  %v3059_v53 = vpop.f32.mrb[86].mxu0 }
 0x306   : > { %v2195_v2 = vadd.f32 %v3059_v53, %v3686_v39  ;;  %v2189_v21 = vpop.f32.mrb[87].mxu0 }
 0x307   : > { %v2190_v22 = vadd.f32 %v3686_v39, %v2189_v21 }
 0x308   : > { %2294 = vst.msk [vmem:[%s3693_s13 + $0x1b8] sm:$0xff] %vm2238_vm3, %v2195_v2 }
 0x309   : > { %2293 = vst.msk [vmem:[%s3693_s13 + $0x1b0] sm:$0xff] %vm2238_vm3, %v2190_v22  ;;  %v3062_v1 = vpop.f32.mrb[88].mxu0 }
 0x30a   : > { %v2205_v13 = vadd.f32 %v3062_v1, %v3686_v39  ;;  %v2199_v27 = vpop.f32.mrb[89].mxu0 }
 0x30b   : > { %v2200_v28 = vadd.f32 %v3686_v39, %v2199_v27 }
 0x30c   : > { %2296 = vst.msk [vmem:[%s3693_s13 + $0x1c8] sm:$0xff] %vm2238_vm3, %v2205_v13 }
 0x30d   : > { %2295 = vst.msk [vmem:[%s3693_s13 + $0x1c0] sm:$0xff] %vm2238_vm3, %v2200_v28  ;;  %v3065_v12 = vpop.f32.mrb[90].mxu0 }
 0x30e   : > { %v2215_v26 = vadd.f32 %v3065_v12, %v3686_v39  ;;  %v2209_v29 = vpop.f32.mrb[91].mxu0 }
 0x30f   : > { %v2210_v31 = vadd.f32 %v3686_v39, %v2209_v29 }
 0x310   : > { %2298 = vst.msk [vmem:[%s3693_s13 + $0x1d8] sm:$0xff] %vm2238_vm3, %v2215_v26 }
 0x311   : > { %2297 = vst.msk [vmem:[%s3693_s13 + $0x1d0] sm:$0xff] %vm2238_vm3, %v2210_v31  ;;  %v3068_v32 = vpop.f32.mrb[92].mxu0 }
 0x312   : > { %v2225_v25 = vadd.f32 %v3068_v32, %v3686_v39  ;;  %v2219_v36 = vpop.f32.mrb[93].mxu0 }
 0x313   : > { %v2220_v37 = vadd.f32 %v3686_v39, %v2219_v36 }
 0x314   : > { %2300 = vst.msk [vmem:[%s3693_s13 + $0x1e8] sm:$0xff] %vm2238_vm3, %v2225_v25 }
 0x315   : > { %2299 = vst.msk [vmem:[%s3693_s13 + $0x1e0] sm:$0xff] %vm2238_vm3, %v2220_v37  ;;  %v3071_v40 = vpop.f32.mrb[94].mxu0 }
 0x316   : > { %v2235_v41 = vadd.f32 %v3071_v40, %v3686_v39  ;;  %v2229_v35 = vpop.f32.mrb[95].mxu0 }
 0x317   : > { %v2230_v10 = vadd.f32 %v3686_v39, %v2229_v35 }
 0x318   : > { %2302 = vst.msk [vmem:[%s3693_s13 + $0x1f8] sm:$0xff] %vm2238_vm3, %v2235_v41 }
 0x319   : > { %2301 = vst.msk [vmem:[%s3693_s13 + $0x1f0] sm:$0xff] %vm2238_vm3, %v2230_v10 }
 0x31a PF: > { %s17_s24 = sadd.s32 1, %s3106_s24  }
 0x31b   : > { %p14_p4 = scmp.ge.s32.totalorder %s17_s24, 4  }
 0x31d   :  { %16 = sbr.rel (!%p14_p4) target bundleno = 1 (0x1), region = 78 }

</bundles_post_ra>
